<compile_context>
chip_gen: v7x
topology: tpu7x:2x2x1
jax: 0.10.0
libtpu: 0.0.40
codegen_flags: <defaults>
</compile_context>

<pallas_src>
import jax
import jax.numpy as jnp
from jax import lax
from jax.experimental import pallas as pl
from jax.experimental.pallas import tpu as pltpu

# ---------------- problem sizes (small, synthetic) ----------------
B = 2          # meta batch size (number of tasks)
N = 128        # sampled points per task (lane axis)
D_IN = 3       # coordinate dim
D_OUT = 1      # field output channels
HIDDEN = 32    # hypo MLP hidden width
NUM_META_STEPS = 3
INIT_LR = 0.01          # lr_type == 'static'  (registered buffer)
DTYPE = jnp.float32

D_AUG = D_IN + 1        # coords augmented with a ones row (folds b1 into W1)
H_AUG = HIDDEN + 1      # hidden augmented with a ones row (folds b2 into W2)
OUT_ROWS = NUM_META_STEPS + 1   # per-step preds + final pred, one lane-dense slab

assert D_OUT == 1, "packed output slab / rank-1 dh outer product assume D_OUT == 1"


def _maml_kernel(x_ref, y_ref, w1a_ref, w2r_ref, w2c_ref, out_ref):
    """Single-shot kernel (no grid): the whole problem lives in VMEM.

    x_ref   : (B, D_AUG, N)    coords^T + ones row (lane-dense)
    y_ref   : (B, D_OUT, N)    targets^T
    w1a_ref : (HIDDEN, D_AUG)  [W1^T | b1^T]
    w2r_ref : (D_OUT, H_AUG)   [W2^T | b2^T]  (row form, drives pred)
    w2c_ref : (HIDDEN, D_OUT)  W2             (column form, drives dh)
    out_ref : (B, OUT_ROWS, N) rows 0..S-1 = per-step preds, row S = final pred
    """
    # MSE mean over ALL (B, N, D_OUT) elements (nn.MSELoss over the whole meta
    # batch); the scale is linear through every gradient, so fold it into the lr.
    lr_eff = INIT_LR * 2.0 / (B * N * D_OUT)
    ones_row = jnp.ones((1, N), jnp.float32)

    # shared (pre-adaptation) hypo params, read once and reused for both tasks
    w1a0 = w1a_ref[...]
    w2r0 = w2r_ref[...]
    w2c0 = w2c_ref[...]

    def forward(x_aug, w1a, w2r):
        # layer 1 on the MXU (b1 folded via the ones row of x_aug)
        h_pre = lax.dot_general(w1a, x_aug, (((1,), (0,)), ((), ())),
                                preferred_element_type=jnp.float32)     # (HIDDEN, N)
        h = jnp.maximum(h_pre, 0.0)
        h_aug = jnp.concatenate([h, ones_row], axis=0)                  # (H_AUG, N)
        # layer 2 on the MXU (b2 folded via the ones row of h_aug)
        pred = lax.dot_general(w2r, h_aug, (((1,), (0,)), ((), ())),
                               preferred_element_type=jnp.float32)      # (D_OUT, N)
        return h_pre, h, h_aug, pred

    for t in range(B):                                    # unrolled meta-batch loop
        x_aug = x_ref[t]                                  # (D_AUG, N)
        y = y_ref[t]                                      # (D_OUT, N)
        w1a, w2r, w2c = w1a0, w2r0, w2c0
        preds = []

        # num_meta_steps is a static buffer -> unrolled Python loop.
        for _ in range(NUM_META_STEPS):
            h_pre, h, h_aug, pred = forward(x_aug, w1a, w2r)
            preds.append(pred)

            r = pred - y                                  # unscaled residual (scale in lr_eff)
            dh = w2c * r                                  # (HIDDEN, N) rank-1 outer product (D_OUT == 1)
            dh_pre = jnp.where(h_pre > 0.0, dh, 0.0)      # relu backward

            # all three fast-weight grads are N=128 contractions on the MXU;
            # db1 / db2 fall out of the ones rows of x_aug / h_aug — no XLU sums.
            dw2c = lax.dot_general(h, r, (((1,), (1,)), ((), ())),
                                   preferred_element_type=jnp.float32)   # (HIDDEN, D_OUT)
            dw1a = lax.dot_general(dh_pre, x_aug, (((1,), (1,)), ((), ())),
                                   preferred_element_type=jnp.float32)   # (HIDDEN, D_AUG) = [dW1^T | db1^T]
            dw2r = lax.dot_general(r, h_aug, (((1,), (1,)), ((), ())),
                                   preferred_element_type=jnp.float32)   # (D_OUT, H_AUG)  = [dW2^T | db2^T]

            # SGD inner update (lr_type='static'); w2r / w2c stay consistent copies
            w1a = w1a - lr_eff * dw1a
            w2r = w2r - lr_eff * dw2r
            w2c = w2c - lr_eff * dw2c

        # final forward with adapted fast params
        _, _, _, pred_final = forward(x_aug, w1a, w2r)
        preds.append(pred_final)

        # one lane-dense (OUT_ROWS, N) store per task instead of OUT_ROWS
        # single-sublane masked stores + a second output DMA.
        out_ref[t] = jnp.concatenate(preds, axis=0).astype(out_ref.dtype)


def _maml_call():
    return pl.pallas_call(
        _maml_kernel,
        out_shape=jax.ShapeDtypeStruct((B, OUT_ROWS, N), DTYPE),
        # no grid: nothing to pipeline at this size -> single shot, whole arrays in VMEM
        in_specs=[pl.BlockSpec(memory_space=pltpu.MemorySpace.VMEM)] * 5,
        out_specs=pl.BlockSpec(memory_space=pltpu.MemorySpace.VMEM),
    )


@jax.jit
def maml_forward(x, y, w1, b1, w2, b2):
    """Returns dict like the torch module: {'model_out', 'intermed_predictions'}."""
    # layout plumbing (outside the kernel): lane-dense (feature, N) + bias tricks
    x_t = jnp.transpose(x, (0, 2, 1))                                        # (B, D_IN, N)
    x_aug = jnp.concatenate([x_t, jnp.ones((B, 1, N), x.dtype)], axis=1)     # (B, D_AUG, N)
    y_t = jnp.transpose(y, (0, 2, 1))                                        # (B, D_OUT, N)
    w1a = jnp.concatenate([w1.T, b1.T], axis=1)                              # (HIDDEN, D_AUG)
    w2r = jnp.concatenate([w2.T, b2.T], axis=1)                              # (D_OUT, H_AUG)
    w2c = w2                                                                 # (HIDDEN, D_OUT)

    packed = _maml_call()(x_aug, y_t, w1a, w2r, w2c)                         # (B, OUT_ROWS, N)

    # split the packed slab and go back to the PyTorch (channels-last) layout
    intermed = jnp.transpose(packed[:, :NUM_META_STEPS, :], (1, 0, 2))[..., None]  # (S, B, N, D_OUT)
    model_out = packed[:, NUM_META_STEPS, :][..., None]                            # (B, N, D_OUT)
    return {"model_out": model_out, "intermed_predictions": intermed}


def maml_forward_ref(x, y, w1, b1, w2, b2):
    """Pure-JAX reference (same math, original layout) for a sanity check."""
    inv_denom = 2.0 / (B * N * D_OUT)
    W1 = jnp.broadcast_to(w1, (B,) + w1.shape)
    B1 = jnp.broadcast_to(b1, (B,) + b1.shape)
    W2 = jnp.broadcast_to(w2, (B,) + w2.shape)
    B2 = jnp.broadcast_to(b2, (B,) + b2.shape)
    intermed = []
    for _ in range(NUM_META_STEPS):
        h_pre = jnp.einsum("bnd,bdh->bnh", x, W1) + B1
        h = jnp.maximum(h_pre, 0.0)
        pred = jnp.einsum("bnh,bho->bno", h, W2) + B2
        intermed.append(pred)
        dpred = inv_denom * (pred - y)
        dW2 = jnp.einsum("bnh,bno->bho", h, dpred)
        dB2 = jnp.sum(dpred, axis=1, keepdims=True)
        dh = jnp.einsum("bno,bho->bnh", dpred, W2)
        dh_pre = dh * (h_pre > 0.0)
        dW1 = jnp.einsum("bnd,bnh->bdh", x, dh_pre)
        dB1 = jnp.sum(dh_pre, axis=1, keepdims=True)
        W1, B1 = W1 - INIT_LR * dW1, B1 - INIT_LR * dB1
        W2, B2 = W2 - INIT_LR * dW2, B2 - INIT_LR * dB2
    h = jnp.maximum(jnp.einsum("bnd,bdh->bnh", x, W1) + B1, 0.0)
    out = jnp.einsum("bnh,bho->bno", h, W2) + B2
    return out, jnp.stack(intermed, axis=0)


# TODO(synk): only lr_type='static' is implemented; the other lr_type variants,
# the second-order (create_graph=True) meta-gradient path, and the host-side
# loss.item() logging ("inner lr too high?") have no role in this forward-only kernel.

if __name__ == "__main__":
    key = jax.random.PRNGKey(0)
    k_x, k_y, k_w1, k_b1, k_w2, k_b2 = jax.random.split(key, 6)

    # inputs
    x = jax.random.uniform(k_x, (B, N, D_IN), DTYPE, minval=-1.0, maxval=1.0)
    y = jax.random.normal(k_y, (B, N, D_OUT), DTYPE)

    # hypo-module params, PyTorch nn.Linear-style uniform init (deterministic)
    k1 = 1.0 / (D_IN ** 0.5)
    k2 = 1.0 / (HIDDEN ** 0.5)
    w1 = jax.random.uniform(k_w1, (D_IN, HIDDEN), DTYPE, minval=-k1, maxval=k1)
    b1 = jax.random.uniform(k_b1, (1, HIDDEN), DTYPE, minval=-k1, maxval=k1)
    w2 = jax.random.uniform(k_w2, (HIDDEN, D_OUT), DTYPE, minval=-k2, maxval=k2)
    b2 = jax.random.uniform(k_b2, (1, D_OUT), DTYPE, minval=-k2, maxval=k2)

    out = maml_forward(x, y, w1, b1, w2, b2)
    jax.block_until_ready(out)

    # sanity check against pure-JAX reference
    ref_out, ref_intermed = maml_forward_ref(x, y, w1, b1, w2, b2)
    assert jnp.allclose(out["model_out"], ref_out, atol=1e-3, rtol=1e-3)
    assert jnp.allclose(out["intermed_predictions"], ref_intermed, atol=1e-3, rtol=1e-3)

    print("KERNEL_OK")
</pallas_src>

<mosaic_0001>
module attributes {stable_mosaic.version = 11 : i64} {
  func.func @_maml_kernel(%arg0: memref<2x4x128xf32, #tpu.memory_space<vmem>>, %arg1: memref<2x1x128xf32, #tpu.memory_space<vmem>>, %arg2: memref<32x4xf32, #tpu.memory_space<vmem>>, %arg3: memref<1x33xf32, #tpu.memory_space<vmem>>, %arg4: memref<32x1xf32, #tpu.memory_space<vmem>>, %arg5: memref<2x4x128xf32, #tpu.memory_space<vmem>>) attributes {dimension_semantics = [], scalar_prefetch = 0 : i64, scratch_operands = 0 : i64, tpu.core_type = #tpu.core_type<tc>} {
    %cst = arith.constant 1.000000e+00 : f32
    %0 = vector.broadcast %cst : f32 to vector<1x128xf32>
    %c0 = arith.constant 0 : index
    %c0_0 = arith.constant 0 : index
    %1 = vector.load %arg2[%c0, %c0_0] : memref<32x4xf32, #tpu.memory_space<vmem>>, vector<32x4xf32>
    %c0_1 = arith.constant 0 : index
    %c0_2 = arith.constant 0 : index
    %2 = vector.load %arg3[%c0_1, %c0_2] : memref<1x33xf32, #tpu.memory_space<vmem>>, vector<1x33xf32>
    %c0_3 = arith.constant 0 : index
    %c0_4 = arith.constant 0 : index
    %3 = vector.load %arg4[%c0_3, %c0_4] : memref<32x1xf32, #tpu.memory_space<vmem>>, vector<32x1xf32>
    %c0_5 = arith.constant 0 : index
    %c0_6 = arith.constant 0 : index
    %c0_7 = arith.constant 0 : index
    %4 = vector.load %arg0[%c0_5, %c0_6, %c0_7] : memref<2x4x128xf32, #tpu.memory_space<vmem>>, vector<1x4x128xf32>
    %5 = vector.shape_cast %4 : vector<1x4x128xf32> to vector<4x128xf32>
    %c0_8 = arith.constant 0 : index
    %c0_9 = arith.constant 0 : index
    %c0_10 = arith.constant 0 : index
    %6 = vector.load %arg1[%c0_8, %c0_9, %c0_10] : memref<2x1x128xf32, #tpu.memory_space<vmem>>, vector<1x1x128xf32>
    %7 = vector.shape_cast %6 : vector<1x1x128xf32> to vector<1x128xf32>
    %cst_11 = arith.constant dense<0.000000e+00> : vector<32x128xf32>
    %8 = tpu.matmul %1, %5, %cst_11 {dimension_numbers = #tpu.dot_dimension_numbers<[1], [0], [0], [1], [0, 0, 1, 1], [], []>} : vector<32x4xf32>, vector<4x128xf32>, vector<32x128xf32> -> vector<32x128xf32>
    %cst_12 = arith.constant 0.000000e+00 : f32
    %9 = vector.broadcast %cst_12 : f32 to vector<32x128xf32>
    %10 = arith.maximumf %8, %9 : vector<32x128xf32>
    %11 = tpu.concatenate %10, %0 in 0 : vector<32x128xf32>, vector<1x128xf32> -> vector<33x128xf32>
    %cst_13 = arith.constant dense<0.000000e+00> : vector<1x128xf32>
    %12 = tpu.matmul %2, %11, %cst_13 {dimension_numbers = #tpu.dot_dimension_numbers<[1], [0], [0], [1], [0, 0, 1, 1], [], []>} : vector<1x33xf32>, vector<33x128xf32>, vector<1x128xf32> -> vector<1x128xf32>
    %13 = arith.subf %12, %7 : vector<1x128xf32>
    %14 = vector.broadcast %3 : vector<32x1xf32> to vector<32x128xf32>
    %15 = vector.broadcast %13 : vector<1x128xf32> to vector<32x128xf32>
    %16 = arith.mulf %14, %15 : vector<32x128xf32>
    %cst_14 = arith.constant 0.000000e+00 : f32
    %17 = vector.broadcast %cst_14 : f32 to vector<32x128xf32>
    %18 = arith.cmpf ogt, %8, %17 : vector<32x128xf32>
    %cst_15 = arith.constant 0.000000e+00 : f32
    %19 = vector.broadcast %cst_15 : f32 to vector<32x128xf32>
    %20 = arith.select %18, %16, %19 : vector<32x128xi1>, vector<32x128xf32>
    %cst_16 = arith.constant dense<0.000000e+00> : vector<32x1xf32>
    %21 = tpu.matmul %10, %13, %cst_16 {dimension_numbers = #tpu.dot_dimension_numbers<[1], [1], [0], [0], [0, 0, 1, 0], [], []>} : vector<32x128xf32>, vector<1x128xf32>, vector<32x1xf32> -> vector<32x1xf32>
    %cst_17 = arith.constant dense<0.000000e+00> : vector<32x4xf32>
    %22 = tpu.matmul %20, %5, %cst_17 {dimension_numbers = #tpu.dot_dimension_numbers<[1], [1], [0], [0], [0, 0, 1, 0], [], []>} : vector<32x128xf32>, vector<4x128xf32>, vector<32x4xf32> -> vector<32x4xf32>
    %cst_18 = arith.constant dense<0.000000e+00> : vector<1x33xf32>
    %23 = tpu.matmul %13, %11, %cst_18 {dimension_numbers = #tpu.dot_dimension_numbers<[1], [1], [0], [0], [0, 0, 1, 0], [], []>} : vector<1x128xf32>, vector<33x128xf32>, vector<1x33xf32> -> vector<1x33xf32>
    %cst_19 = arith.constant 7.812500e-05 : f32
    %24 = vector.broadcast %cst_19 : f32 to vector<32x4xf32>
    %25 = arith.mulf %24, %22 : vector<32x4xf32>
    %26 = arith.subf %1, %25 : vector<32x4xf32>
    %cst_20 = arith.constant 7.812500e-05 : f32
    %27 = vector.broadcast %cst_20 : f32 to vector<1x33xf32>
    %28 = arith.mulf %27, %23 : vector<1x33xf32>
    %29 = arith.subf %2, %28 : vector<1x33xf32>
    %cst_21 = arith.constant 7.812500e-05 : f32
    %30 = vector.broadcast %cst_21 : f32 to vector<32x1xf32>
    %31 = arith.mulf %30, %21 : vector<32x1xf32>
    %32 = arith.subf %3, %31 : vector<32x1xf32>
    %cst_22 = arith.constant dense<0.000000e+00> : vector<32x128xf32>
    %33 = tpu.matmul %26, %5, %cst_22 {dimension_numbers = #tpu.dot_dimension_numbers<[1], [0], [0], [1], [0, 0, 1, 1], [], []>} : vector<32x4xf32>, vector<4x128xf32>, vector<32x128xf32> -> vector<32x128xf32>
    %cst_23 = arith.constant 0.000000e+00 : f32
    %34 = vector.broadcast %cst_23 : f32 to vector<32x128xf32>
    %35 = arith.maximumf %33, %34 : vector<32x128xf32>
    %36 = tpu.concatenate %35, %0 in 0 : vector<32x128xf32>, vector<1x128xf32> -> vector<33x128xf32>
    %cst_24 = arith.constant dense<0.000000e+00> : vector<1x128xf32>
    %37 = tpu.matmul %29, %36, %cst_24 {dimension_numbers = #tpu.dot_dimension_numbers<[1], [0], [0], [1], [0, 0, 1, 1], [], []>} : vector<1x33xf32>, vector<33x128xf32>, vector<1x128xf32> -> vector<1x128xf32>
    %38 = arith.subf %37, %7 : vector<1x128xf32>
    %39 = vector.broadcast %32 : vector<32x1xf32> to vector<32x128xf32>
    %40 = vector.broadcast %38 : vector<1x128xf32> to vector<32x128xf32>
    %41 = arith.mulf %39, %40 : vector<32x128xf32>
    %cst_25 = arith.constant 0.000000e+00 : f32
    %42 = vector.broadcast %cst_25 : f32 to vector<32x128xf32>
    %43 = arith.cmpf ogt, %33, %42 : vector<32x128xf32>
    %cst_26 = arith.constant 0.000000e+00 : f32
    %44 = vector.broadcast %cst_26 : f32 to vector<32x128xf32>
    %45 = arith.select %43, %41, %44 : vector<32x128xi1>, vector<32x128xf32>
    %cst_27 = arith.constant dense<0.000000e+00> : vector<32x1xf32>
    %46 = tpu.matmul %35, %38, %cst_27 {dimension_numbers = #tpu.dot_dimension_numbers<[1], [1], [0], [0], [0, 0, 1, 0], [], []>} : vector<32x128xf32>, vector<1x128xf32>, vector<32x1xf32> -> vector<32x1xf32>
    %cst_28 = arith.constant dense<0.000000e+00> : vector<32x4xf32>
    %47 = tpu.matmul %45, %5, %cst_28 {dimension_numbers = #tpu.dot_dimension_numbers<[1], [1], [0], [0], [0, 0, 1, 0], [], []>} : vector<32x128xf32>, vector<4x128xf32>, vector<32x4xf32> -> vector<32x4xf32>
    %cst_29 = arith.constant dense<0.000000e+00> : vector<1x33xf32>
    %48 = tpu.matmul %38, %36, %cst_29 {dimension_numbers = #tpu.dot_dimension_numbers<[1], [1], [0], [0], [0, 0, 1, 0], [], []>} : vector<1x128xf32>, vector<33x128xf32>, vector<1x33xf32> -> vector<1x33xf32>
    %cst_30 = arith.constant 7.812500e-05 : f32
    %49 = vector.broadcast %cst_30 : f32 to vector<32x4xf32>
    %50 = arith.mulf %49, %47 : vector<32x4xf32>
    %51 = arith.subf %26, %50 : vector<32x4xf32>
    %cst_31 = arith.constant 7.812500e-05 : f32
    %52 = vector.broadcast %cst_31 : f32 to vector<1x33xf32>
    %53 = arith.mulf %52, %48 : vector<1x33xf32>
    %54 = arith.subf %29, %53 : vector<1x33xf32>
    %cst_32 = arith.constant 7.812500e-05 : f32
    %55 = vector.broadcast %cst_32 : f32 to vector<32x1xf32>
    %56 = arith.mulf %55, %46 : vector<32x1xf32>
    %57 = arith.subf %32, %56 : vector<32x1xf32>
    %cst_33 = arith.constant dense<0.000000e+00> : vector<32x128xf32>
    %58 = tpu.matmul %51, %5, %cst_33 {dimension_numbers = #tpu.dot_dimension_numbers<[1], [0], [0], [1], [0, 0, 1, 1], [], []>} : vector<32x4xf32>, vector<4x128xf32>, vector<32x128xf32> -> vector<32x128xf32>
    %cst_34 = arith.constant 0.000000e+00 : f32
    %59 = vector.broadcast %cst_34 : f32 to vector<32x128xf32>
    %60 = arith.maximumf %58, %59 : vector<32x128xf32>
    %61 = tpu.concatenate %60, %0 in 0 : vector<32x128xf32>, vector<1x128xf32> -> vector<33x128xf32>
    %cst_35 = arith.constant dense<0.000000e+00> : vector<1x128xf32>
    %62 = tpu.matmul %54, %61, %cst_35 {dimension_numbers = #tpu.dot_dimension_numbers<[1], [0], [0], [1], [0, 0, 1, 1], [], []>} : vector<1x33xf32>, vector<33x128xf32>, vector<1x128xf32> -> vector<1x128xf32>
    %63 = arith.subf %62, %7 : vector<1x128xf32>
    %64 = vector.broadcast %57 : vector<32x1xf32> to vector<32x128xf32>
    %65 = vector.broadcast %63 : vector<1x128xf32> to vector<32x128xf32>
    %66 = arith.mulf %64, %65 : vector<32x128xf32>
    %cst_36 = arith.constant 0.000000e+00 : f32
    %67 = vector.broadcast %cst_36 : f32 to vector<32x128xf32>
    %68 = arith.cmpf ogt, %58, %67 : vector<32x128xf32>
    %cst_37 = arith.constant 0.000000e+00 : f32
    %69 = vector.broadcast %cst_37 : f32 to vector<32x128xf32>
    %70 = arith.select %68, %66, %69 : vector<32x128xi1>, vector<32x128xf32>
    %cst_38 = arith.constant dense<0.000000e+00> : vector<32x4xf32>
    %71 = tpu.matmul %70, %5, %cst_38 {dimension_numbers = #tpu.dot_dimension_numbers<[1], [1], [0], [0], [0, 0, 1, 0], [], []>} : vector<32x128xf32>, vector<4x128xf32>, vector<32x4xf32> -> vector<32x4xf32>
    %cst_39 = arith.constant dense<0.000000e+00> : vector<1x33xf32>
    %72 = tpu.matmul %63, %61, %cst_39 {dimension_numbers = #tpu.dot_dimension_numbers<[1], [1], [0], [0], [0, 0, 1, 0], [], []>} : vector<1x128xf32>, vector<33x128xf32>, vector<1x33xf32> -> vector<1x33xf32>
    %cst_40 = arith.constant 7.812500e-05 : f32
    %73 = vector.broadcast %cst_40 : f32 to vector<32x4xf32>
    %74 = arith.mulf %73, %71 : vector<32x4xf32>
    %75 = arith.subf %51, %74 : vector<32x4xf32>
    %cst_41 = arith.constant 7.812500e-05 : f32
    %76 = vector.broadcast %cst_41 : f32 to vector<1x33xf32>
    %77 = arith.mulf %76, %72 : vector<1x33xf32>
    %78 = arith.subf %54, %77 : vector<1x33xf32>
    %cst_42 = arith.constant dense<0.000000e+00> : vector<32x128xf32>
    %79 = tpu.matmul %75, %5, %cst_42 {dimension_numbers = #tpu.dot_dimension_numbers<[1], [0], [0], [1], [0, 0, 1, 1], [], []>} : vector<32x4xf32>, vector<4x128xf32>, vector<32x128xf32> -> vector<32x128xf32>
    %cst_43 = arith.constant 0.000000e+00 : f32
    %80 = vector.broadcast %cst_43 : f32 to vector<32x128xf32>
    %81 = arith.maximumf %79, %80 : vector<32x128xf32>
    %82 = tpu.concatenate %81, %0 in 0 : vector<32x128xf32>, vector<1x128xf32> -> vector<33x128xf32>
    %cst_44 = arith.constant dense<0.000000e+00> : vector<1x128xf32>
    %83 = tpu.matmul %78, %82, %cst_44 {dimension_numbers = #tpu.dot_dimension_numbers<[1], [0], [0], [1], [0, 0, 1, 1], [], []>} : vector<1x33xf32>, vector<33x128xf32>, vector<1x128xf32> -> vector<1x128xf32>
    %84 = tpu.concatenate %12, %37, %62, %83 in 0 : vector<1x128xf32>, vector<1x128xf32>, vector<1x128xf32>, vector<1x128xf32> -> vector<4x128xf32>
    %c0_45 = arith.constant 0 : index
    %c0_46 = arith.constant 0 : index
    %c0_47 = arith.constant 0 : index
    %85 = vector.load %arg5[%c0_45, %c0_46, %c0_47] : memref<2x4x128xf32, #tpu.memory_space<vmem>>, vector<1x4x128xf32>
    %86 = vector.shape_cast %85 : vector<1x4x128xf32> to vector<4x128xf32>
    %87 = vector.shape_cast %84 : vector<4x128xf32> to vector<1x4x128xf32>
    tpu.vector_store %arg5[%c0_45, %c0_46, %c0_47], %87 {strides = array<i32>} : memref<2x4x128xf32, #tpu.memory_space<vmem>>, vector<1x4x128xf32>,
    %c1 = arith.constant 1 : index
    %c0_48 = arith.constant 0 : index
    %c0_49 = arith.constant 0 : index
    %88 = vector.load %arg0[%c1, %c0_48, %c0_49] : memref<2x4x128xf32, #tpu.memory_space<vmem>>, vector<1x4x128xf32>
    %89 = vector.shape_cast %88 : vector<1x4x128xf32> to vector<4x128xf32>
    %c1_50 = arith.constant 1 : index
    %c0_51 = arith.constant 0 : index
    %c0_52 = arith.constant 0 : index
    %90 = vector.load %arg1[%c1_50, %c0_51, %c0_52] : memref<2x1x128xf32, #tpu.memory_space<vmem>>, vector<1x1x128xf32>
    %91 = vector.shape_cast %90 : vector<1x1x128xf32> to vector<1x128xf32>
    %cst_53 = arith.constant dense<0.000000e+00> : vector<32x128xf32>
    %92 = tpu.matmul %1, %89, %cst_53 {dimension_numbers = #tpu.dot_dimension_numbers<[1], [0], [0], [1], [0, 0, 1, 1], [], []>} : vector<32x4xf32>, vector<4x128xf32>, vector<32x128xf32> -> vector<32x128xf32>
    %cst_54 = arith.constant 0.000000e+00 : f32
    %93 = vector.broadcast %cst_54 : f32 to vector<32x128xf32>
    %94 = arith.maximumf %92, %93 : vector<32x128xf32>
    %95 = tpu.concatenate %94, %0 in 0 : vector<32x128xf32>, vector<1x128xf32> -> vector<33x128xf32>
    %cst_55 = arith.constant dense<0.000000e+00> : vector<1x128xf32>
    %96 = tpu.matmul %2, %95, %cst_55 {dimension_numbers = #tpu.dot_dimension_numbers<[1], [0], [0], [1], [0, 0, 1, 1], [], []>} : vector<1x33xf32>, vector<33x128xf32>, vector<1x128xf32> -> vector<1x128xf32>
    %97 = arith.subf %96, %91 : vector<1x128xf32>
    %98 = vector.broadcast %3 : vector<32x1xf32> to vector<32x128xf32>
    %99 = vector.broadcast %97 : vector<1x128xf32> to vector<32x128xf32>
    %100 = arith.mulf %98, %99 : vector<32x128xf32>
    %cst_56 = arith.constant 0.000000e+00 : f32
    %101 = vector.broadcast %cst_56 : f32 to vector<32x128xf32>
    %102 = arith.cmpf ogt, %92, %101 : vector<32x128xf32>
    %cst_57 = arith.constant 0.000000e+00 : f32
    %103 = vector.broadcast %cst_57 : f32 to vector<32x128xf32>
    %104 = arith.select %102, %100, %103 : vector<32x128xi1>, vector<32x128xf32>
    %cst_58 = arith.constant dense<0.000000e+00> : vector<32x1xf32>
    %105 = tpu.matmul %94, %97, %cst_58 {dimension_numbers = #tpu.dot_dimension_numbers<[1], [1], [0], [0], [0, 0, 1, 0], [], []>} : vector<32x128xf32>, vector<1x128xf32>, vector<32x1xf32> -> vector<32x1xf32>
    %cst_59 = arith.constant dense<0.000000e+00> : vector<32x4xf32>
    %106 = tpu.matmul %104, %89, %cst_59 {dimension_numbers = #tpu.dot_dimension_numbers<[1], [1], [0], [0], [0, 0, 1, 0], [], []>} : vector<32x128xf32>, vector<4x128xf32>, vector<32x4xf32> -> vector<32x4xf32>
    %cst_60 = arith.constant dense<0.000000e+00> : vector<1x33xf32>
    %107 = tpu.matmul %97, %95, %cst_60 {dimension_numbers = #tpu.dot_dimension_numbers<[1], [1], [0], [0], [0, 0, 1, 0], [], []>} : vector<1x128xf32>, vector<33x128xf32>, vector<1x33xf32> -> vector<1x33xf32>
    %cst_61 = arith.constant 7.812500e-05 : f32
    %108 = vector.broadcast %cst_61 : f32 to vector<32x4xf32>
    %109 = arith.mulf %108, %106 : vector<32x4xf32>
    %110 = arith.subf %1, %109 : vector<32x4xf32>
    %cst_62 = arith.constant 7.812500e-05 : f32
    %111 = vector.broadcast %cst_62 : f32 to vector<1x33xf32>
    %112 = arith.mulf %111, %107 : vector<1x33xf32>
    %113 = arith.subf %2, %112 : vector<1x33xf32>
    %cst_63 = arith.constant 7.812500e-05 : f32
    %114 = vector.broadcast %cst_63 : f32 to vector<32x1xf32>
    %115 = arith.mulf %114, %105 : vector<32x1xf32>
    %116 = arith.subf %3, %115 : vector<32x1xf32>
    %cst_64 = arith.constant dense<0.000000e+00> : vector<32x128xf32>
    %117 = tpu.matmul %110, %89, %cst_64 {dimension_numbers = #tpu.dot_dimension_numbers<[1], [0], [0], [1], [0, 0, 1, 1], [], []>} : vector<32x4xf32>, vector<4x128xf32>, vector<32x128xf32> -> vector<32x128xf32>
    %cst_65 = arith.constant 0.000000e+00 : f32
    %118 = vector.broadcast %cst_65 : f32 to vector<32x128xf32>
    %119 = arith.maximumf %117, %118 : vector<32x128xf32>
    %120 = tpu.concatenate %119, %0 in 0 : vector<32x128xf32>, vector<1x128xf32> -> vector<33x128xf32>
    %cst_66 = arith.constant dense<0.000000e+00> : vector<1x128xf32>
    %121 = tpu.matmul %113, %120, %cst_66 {dimension_numbers = #tpu.dot_dimension_numbers<[1], [0], [0], [1], [0, 0, 1, 1], [], []>} : vector<1x33xf32>, vector<33x128xf32>, vector<1x128xf32> -> vector<1x128xf32>
    %122 = arith.subf %121, %91 : vector<1x128xf32>
    %123 = vector.broadcast %116 : vector<32x1xf32> to vector<32x128xf32>
    %124 = vector.broadcast %122 : vector<1x128xf32> to vector<32x128xf32>
    %125 = arith.mulf %123, %124 : vector<32x128xf32>
    %cst_67 = arith.constant 0.000000e+00 : f32
    %126 = vector.broadcast %cst_67 : f32 to vector<32x128xf32>
    %127 = arith.cmpf ogt, %117, %126 : vector<32x128xf32>
    %cst_68 = arith.constant 0.000000e+00 : f32
    %128 = vector.broadcast %cst_68 : f32 to vector<32x128xf32>
    %129 = arith.select %127, %125, %128 : vector<32x128xi1>, vector<32x128xf32>
    %cst_69 = arith.constant dense<0.000000e+00> : vector<32x1xf32>
    %130 = tpu.matmul %119, %122, %cst_69 {dimension_numbers = #tpu.dot_dimension_numbers<[1], [1], [0], [0], [0, 0, 1, 0], [], []>} : vector<32x128xf32>, vector<1x128xf32>, vector<32x1xf32> -> vector<32x1xf32>
    %cst_70 = arith.constant dense<0.000000e+00> : vector<32x4xf32>
    %131 = tpu.matmul %129, %89, %cst_70 {dimension_numbers = #tpu.dot_dimension_numbers<[1], [1], [0], [0], [0, 0, 1, 0], [], []>} : vector<32x128xf32>, vector<4x128xf32>, vector<32x4xf32> -> vector<32x4xf32>
    %cst_71 = arith.constant dense<0.000000e+00> : vector<1x33xf32>
    %132 = tpu.matmul %122, %120, %cst_71 {dimension_numbers = #tpu.dot_dimension_numbers<[1], [1], [0], [0], [0, 0, 1, 0], [], []>} : vector<1x128xf32>, vector<33x128xf32>, vector<1x33xf32> -> vector<1x33xf32>
    %cst_72 = arith.constant 7.812500e-05 : f32
    %133 = vector.broadcast %cst_72 : f32 to vector<32x4xf32>
    %134 = arith.mulf %133, %131 : vector<32x4xf32>
    %135 = arith.subf %110, %134 : vector<32x4xf32>
    %cst_73 = arith.constant 7.812500e-05 : f32
    %136 = vector.broadcast %cst_73 : f32 to vector<1x33xf32>
    %137 = arith.mulf %136, %132 : vector<1x33xf32>
    %138 = arith.subf %113, %137 : vector<1x33xf32>
    %cst_74 = arith.constant 7.812500e-05 : f32
    %139 = vector.broadcast %cst_74 : f32 to vector<32x1xf32>
    %140 = arith.mulf %139, %130 : vector<32x1xf32>
    %141 = arith.subf %116, %140 : vector<32x1xf32>
    %cst_75 = arith.constant dense<0.000000e+00> : vector<32x128xf32>
    %142 = tpu.matmul %135, %89, %cst_75 {dimension_numbers = #tpu.dot_dimension_numbers<[1], [0], [0], [1], [0, 0, 1, 1], [], []>} : vector<32x4xf32>, vector<4x128xf32>, vector<32x128xf32> -> vector<32x128xf32>
    %cst_76 = arith.constant 0.000000e+00 : f32
    %143 = vector.broadcast %cst_76 : f32 to vector<32x128xf32>
    %144 = arith.maximumf %142, %143 : vector<32x128xf32>
    %145 = tpu.concatenate %144, %0 in 0 : vector<32x128xf32>, vector<1x128xf32> -> vector<33x128xf32>
    %cst_77 = arith.constant dense<0.000000e+00> : vector<1x128xf32>
    %146 = tpu.matmul %138, %145, %cst_77 {dimension_numbers = #tpu.dot_dimension_numbers<[1], [0], [0], [1], [0, 0, 1, 1], [], []>} : vector<1x33xf32>, vector<33x128xf32>, vector<1x128xf32> -> vector<1x128xf32>
    %147 = arith.subf %146, %91 : vector<1x128xf32>
    %148 = vector.broadcast %141 : vector<32x1xf32> to vector<32x128xf32>
    %149 = vector.broadcast %147 : vector<1x128xf32> to vector<32x128xf32>
    %150 = arith.mulf %148, %149 : vector<32x128xf32>
    %cst_78 = arith.constant 0.000000e+00 : f32
    %151 = vector.broadcast %cst_78 : f32 to vector<32x128xf32>
    %152 = arith.cmpf ogt, %142, %151 : vector<32x128xf32>
    %cst_79 = arith.constant 0.000000e+00 : f32
    %153 = vector.broadcast %cst_79 : f32 to vector<32x128xf32>
    %154 = arith.select %152, %150, %153 : vector<32x128xi1>, vector<32x128xf32>
    %cst_80 = arith.constant dense<0.000000e+00> : vector<32x4xf32>
    %155 = tpu.matmul %154, %89, %cst_80 {dimension_numbers = #tpu.dot_dimension_numbers<[1], [1], [0], [0], [0, 0, 1, 0], [], []>} : vector<32x128xf32>, vector<4x128xf32>, vector<32x4xf32> -> vector<32x4xf32>
    %cst_81 = arith.constant dense<0.000000e+00> : vector<1x33xf32>
    %156 = tpu.matmul %147, %145, %cst_81 {dimension_numbers = #tpu.dot_dimension_numbers<[1], [1], [0], [0], [0, 0, 1, 0], [], []>} : vector<1x128xf32>, vector<33x128xf32>, vector<1x33xf32> -> vector<1x33xf32>
    %cst_82 = arith.constant 7.812500e-05 : f32
    %157 = vector.broadcast %cst_82 : f32 to vector<32x4xf32>
    %158 = arith.mulf %157, %155 : vector<32x4xf32>
    %159 = arith.subf %135, %158 : vector<32x4xf32>
    %cst_83 = arith.constant 7.812500e-05 : f32
    %160 = vector.broadcast %cst_83 : f32 to vector<1x33xf32>
    %161 = arith.mulf %160, %156 : vector<1x33xf32>
    %162 = arith.subf %138, %161 : vector<1x33xf32>
    %cst_84 = arith.constant dense<0.000000e+00> : vector<32x128xf32>
    %163 = tpu.matmul %159, %89, %cst_84 {dimension_numbers = #tpu.dot_dimension_numbers<[1], [0], [0], [1], [0, 0, 1, 1], [], []>} : vector<32x4xf32>, vector<4x128xf32>, vector<32x128xf32> -> vector<32x128xf32>
    %cst_85 = arith.constant 0.000000e+00 : f32
    %164 = vector.broadcast %cst_85 : f32 to vector<32x128xf32>
    %165 = arith.maximumf %163, %164 : vector<32x128xf32>
    %166 = tpu.concatenate %165, %0 in 0 : vector<32x128xf32>, vector<1x128xf32> -> vector<33x128xf32>
    %cst_86 = arith.constant dense<0.000000e+00> : vector<1x128xf32>
    %167 = tpu.matmul %162, %166, %cst_86 {dimension_numbers = #tpu.dot_dimension_numbers<[1], [0], [0], [1], [0, 0, 1, 1], [], []>} : vector<1x33xf32>, vector<33x128xf32>, vector<1x128xf32> -> vector<1x128xf32>
    %168 = tpu.concatenate %96, %121, %146, %167 in 0 : vector<1x128xf32>, vector<1x128xf32>, vector<1x128xf32>, vector<1x128xf32> -> vector<4x128xf32>
    %c1_87 = arith.constant 1 : index
    %c0_88 = arith.constant 0 : index
    %c0_89 = arith.constant 0 : index
    %169 = vector.load %arg5[%c1_87, %c0_88, %c0_89] : memref<2x4x128xf32, #tpu.memory_space<vmem>>, vector<1x4x128xf32>
    %170 = vector.shape_cast %169 : vector<1x4x128xf32> to vector<4x128xf32>
    %171 = vector.shape_cast %168 : vector<4x128xf32> to vector<1x4x128xf32>
    tpu.vector_store %arg5[%c1_87, %c0_88, %c0_89], %171 {strides = array<i32>} : memref<2x4x128xf32, #tpu.memory_space<vmem>>, vector<1x4x128xf32>,
    return
  }
}

</mosaic_0001>

<bundles_post_ra>
// kernel: maml_forward.1
= control target key start
LH: loop header
LB: loop body
LE: loop exit
PB: predicated region body
PF: predicated region fallthrough
CT: control target
= control target key end

     0   :  { %vm44_vm0 = vcmask 1043456   ;;  %vm31_vm1 = vcmask 31744   ;;  %v3352_v5 = vmov 0.0|0.0   ;;  %vm3353_vm2 = vmmov 0   ;;  %s3831_s0 = inlined_call_operand.vmem [shape: f32[2,4,128], index: 0, kind: input, shape index: {}]   ;;  %s3832_s2 = inlined_call_operand.vmem [shape: f32[32,4], index: 2, kind: input, shape index: {}]   ;;  %s3833_s4 = inlined_call_operand.vmem [shape: f32[32,1], index: 4, kind: input, shape index: {}]   ;;  %s3834_s3 = inlined_call_operand.vmem [shape: f32[1,33], index: 3, kind: input, shape index: {}]   ;;  %s3835_s1 = inlined_call_operand.vmem [shape: f32[2,1,128], index: 1, kind: input, shape index: {}]   ;;  %s3836_s5 = inlined_call_operand.vmem [shape: f32[2,4,128], index: 5, kind: output, shape index: {}]  }
   0x1   :  { %v3390_v0 = vld [vmem:[%s3831_s0] sm:$0xf]  ;;  %v3400_v2 = vld [vmem:[%s3832_s2 + $0x8] sm:$0xff]  ;;  %v3409_v3 = vld [vmem:[%s3832_s2 + $0x10] sm:$0xff]  ;;  %3261 = vmatprep.subr.bf16.mxu1 %v3352_v5  ;;  %v3354_v6 = vmov 0.0   ;;  %v3355_v7 = vmov 0   ;;  %v236_v24 = vlaneseq }
   0x2   :  { %v3395_v1 = vld [vmem:[%s3832_s2] sm:$0xff]  ;;  %2967 = vmatprep.subr.msk.mxu0 %vm44_vm0, %v3390_v0  ;;  %v3421_v4 = vld [vmem:[%s3832_s2 + $0x18] sm:$0xff]  ;;  %2985 = vmatprep.mubr.msk.f32.mxu1 %vm3353_vm2, %v3354_v6  ;;  %v3438_v9 = vld [vmem:[%s3833_s4 + $0x10] sm:$0xff]  ;;  %vm141_vm3 = vcmask 1040384   ;;  %vm137_vm4 = vcmask 269312   ;;  %v3356_v23 = vmov 1.0  }
   0x3   :  { %2969 = vmatprep.mubr.msk.f32.mxu0 %vm31_vm1, %v3395_v1  ;;  %2968 = vmatpush3.msk.msra.mxu0 %vm44_vm0, %v3390_v0  ;;  %v3433_v8 = vld [vmem:[%s3833_s4] sm:$0xff]  ;;  %v3445_v10 = vld [vmem:[%s3833_s4 + $0x8] sm:$0xff]  ;;  %v3450_v11 = vld [vmem:[%s3833_s4 + $0x18] sm:$0xff]  ;;  %v237_v25 = vshrl.u32 %v236_v24, 7  ;;  %vm1393_vm13 = vcmask 1041408  }
   0x4   :  { %2970 = vmatmul.mubr.msk.f32.vlgmr.msra.gmra.mrb[0].mxu0 %vm31_vm1, %v3400_v2  ;;  %2988 = vmatprep.subr.mxu0 %v3390_v0  ;;  %v3459_v22 = vld [vmem:[%s3834_s3] sm:$0x1] }
   0x5   :  { %2972 = vmatprep.mubr.msk.f32.mxu0 %vm31_vm1, %v3409_v3  ;;  %3350 = vset.pattern.permute.xlu0 %v3355_v7  ;;  %v3475_v27 = vld [vmem:[%s3835_s1] sm:$0x1]  ;;  %v3477_v28 = vsub.s32 0, %v237_v25 }
   0x6   :  { %3351 = vset.pattern.permute.xlu1 %v3355_v7  ;;  %218 = vperm.xlu0 %3350, %v3433_v8  }
   0x7   :  { %228 = vperm.xlu1 %3351, %v3438_v9  }
   0x8   :  { %2973 = vmatmul.mubr.msk.f32.gmra.mrb[2].mxu0 %vm31_vm1, %v3421_v4 }
   0xa   :  { %2989 = vmatpush3.xpose.msra.mxu0 %v3390_v0  ;;  %223 = vperm.xlu0 %3350, %v3445_v10  }
   0xb   :  { %3267 = vmatprep.subr.bf16.mxu0 %v3352_v5  ;;  %233 = vperm.xlu1 %3351, %v3450_v11  }
  0x85   :  { %v3470_v26 = vpop.permute.xlu0 %218 }
  0x86   :  { %v3483_v32 = vpop.permute.xlu1 %228 }
  0x89   :  { %v3486_v34 = vpop.permute.xlu0 %223 }
  0x8a   :  { %v3490_v39 = vpop.permute.xlu1 %233 }
  0xd7   :  { %v2971_v12 = vpop.f32.mrb[0].mxu0 }
  0xd8   :  { %v134_v13 = vmax.f32 %v2971_v12, 0.0  ;;  %v114_v14 = vpop.f32.mrb[1].mxu0  ;;  %vm245_vm6 = vcmp.gt.f32.partialorder %v2971_v12, 0.0 }
  0xd9   :  { %v133_v15 = vmax.f32 %v114_v14, 0.0  ;;  %vm244_vm5 = vcmp.gt.f32.partialorder %v114_v14, 0.0 }
  0xdb   :  { %v2974_v16 = vpop.f32.mrb[2].mxu0  ;;  %v3262_v17 = vpack.c.bf16 %v134_v13, %v133_v15 }
  0xdc   :  { %v136_v18 = vmax.f32 %v2974_v16, 0.0  ;;  %v124_v19 = vpop.f32.mrb[3].mxu0  ;;  %vm247_vm8 = vcmp.gt.f32.partialorder %v2974_v16, 0.0 }
  0xdd   :  { %v135_v20 = vmax.f32 %v124_v19, 0.0  ;;  %3263 = vmatpush3.bf16.msra.mxu1 %v3262_v17  ;;  %vm246_vm7 = vcmp.gt.f32.partialorder %v124_v19, 0.0 }
  0xde   :  { %3264 = vmatprep.subr.bf16.mxu1 %v3352_v5 }
  0xdf   :  { %v3265_v21 = vpack.c.bf16 %v136_v18, %v135_v20 }
  0xe1   :  { %3266 = vmatpush3.bf16.msra.mxu1 %v3265_v21 }
  0xe2   :  { %2983 = vmatprep.subr.mxu1 %v3354_v6 }
  0xe5   :  { %2984 = vmatpush3.msk.msra.mxu1 %vm141_vm3, %v3356_v23 }
  0xe6   :  { %2986 = vmatmul.mubr.msk.f32.vlgmr.msra.gmra.mrb[0].mxu1 %vm137_vm4, %v3459_v22  ;;  %3009 = vmatprep.subr.msk.mxu1 %vm44_vm0, %v3390_v0 }
  0xe7   :  { %3010 = vmatpush3.msk.msra.mxu1 %vm44_vm0, %v3390_v0 }
  0xe8   :  { %3273 = vmatprep.subr.bf16.mxu1 %v3352_v5 }
 0x1b9   :  { %v3479_v29 = vpop.f32.mrb[0].mxu1 }
 0x1ba   :  { %v215_v30 = vsub.f32 %v3479_v29, %v3475_v27  ;;  %v2987_v31 = vpop.f32.mrb[1].mxu1 }
 0x1bc   :  { %v239_v33 = vrot.slane %v215_v30, %v3477_v28 }
 0x1be   :  { %v241_v35 = vmul.f32 %v239_v33, %v3486_v34  ;;  %v253_v36 = vmul.f32 %v239_v33, %v134_v13  ;;  %v252_v37 = vmul.f32 %v239_v33, %v133_v15  ;;  %v240_v38 = vmul.f32 %v239_v33, %v3470_v26 }
 0x1bf   :  { %v242_v40 = vmul.f32 %v239_v33, %v3483_v32  ;;  %v254_v41 = vmul.f32 %v239_v33, %v135_v20  ;;  %v243_v42 = vmul.f32 %v239_v33, %v3490_v39  ;;  %v255_v43 = vmul.f32 %v239_v33, %v136_v18 }
 0x1c0   :  { %258 = vadd.xlane.f32.xlu1 %v253_v36  ;;  %256 = vadd.xlane.f32.xlu0 %v252_v37 }
 0x1c1   :  { %2990 = vmatprep.mubr.msk.f32.mxu0 %vm244_vm5, %v240_v38 }
 0x1c2   :  { %2991 = vmatmul.mubr.msk.f32.vlgmr.msra.gmra.mrb[4].mxu0 %vm245_vm6, %v241_v35 }
 0x1c3   :  { %3269 = vmatpush3.bf16.xpose.msra.mxu0 %v3262_v17  ;;  %2993 = vmatprep.mubr.msk.f32.mxu0 %vm246_vm7, %v242_v40  ;;  %vm1395_vm7 = vcmask 1042432  }
 0x1c4   :  { %260 = vadd.xlane.f32.xlu0 %v254_v41  ;;  %3270 = vmatprep.subr.bf16.mxu0 %v3352_v5 }
 0x1c6   :  { %2994 = vmatmul.mubr.msk.f32.gmra.mrb[6].mxu0 %vm247_vm8, %v243_v42 }
 0x1c7   :  { %3006 = vmatprep.mubr.msk.f32.mxu0 %vm3353_vm2, %v3354_v6 }
 0x1c8   :  { %262 = vadd.xlane.f32.xlu0 %v255_v43 }
 0x1cb   :  { %3272 = vmatpush3.bf16.xpose.msra.mxu0 %v3265_v21 }
 0x1cc   :  { %3004 = vmatprep.subr.mxu0 %v3354_v6 }
 0x1d3   :  { %3005 = vmatpush3.xpose.msra.mxu0 %v3356_v23 }
 0x1d4   :  { %3051 = vmatprep.subr.msk.mxu0 %vm44_vm0, %v3390_v0 }
 0x1d6   :  { %3007 = vmatmul.mubr.f32.vlgmr.msra.gmra.mrb[8].mxu0 %v215_v30 }
 0x1d7   :  { %3052 = vmatpush3.msk.msra.mxu0 %vm44_vm0, %v3390_v0 }
 0x1d8   :  { %3285 = vmatprep.subr.bf16.mxu0 %v3352_v5 }
 0x24d   :  { %v259_v44 = vpop.xlane.xlu1 %258  ;;  %v257_v45 = vpop.xlane.xlu0 %256 }
 0x24e   :  { %v430_v46 = vmul.f32 7.8125e-05, %v259_v44  ;;  %v429_v47 = vmul.f32 7.8125e-05, %v257_v45 }
 0x250   :  { %v3505_v48 = vsub.f32 %v3445_v10, %v430_v46  ;;  %v3508_v49 = vsub.f32 %v3433_v8, %v429_v47 }
 0x251   :  { %v261_v50 = vpop.xlane.xlu0 %260 }
 0x252   :  { %v431_v51 = vmul.f32 7.8125e-05, %v261_v50  ;;  %619 = vperm.xlu0 %3350, %v3505_v48   ;;  %614 = vperm.xlu1 %3351, %v3508_v49  }
 0x254   :  { %v3513_v52 = vsub.f32 %v3438_v9, %v431_v51 }
 0x255   :  { %v263_v53 = vpop.xlane.xlu0 %262 }
 0x256   :  { %v432_v54 = vmul.f32 7.8125e-05, %v263_v53  ;;  %624 = vperm.xlu1 %3351, %v3513_v52  }
 0x258   :  { %v3517_v55 = vsub.f32 %v3450_v11, %v432_v54 }
 0x25a   :  { %629 = vperm.xlu1 %3351, %v3517_v55  }
 0x295   :  { %v2992_v56 = vpop.f32.mrb[4].mxu0 }
 0x296   :  { %v420_v57 = vmul.f32 7.8125e-05, %v2992_v56  ;;  %v330_v58 = vpop.f32.mrb[5].mxu0 }
 0x297   :  { %v419_v59 = vmul.f32 7.8125e-05, %v330_v58 }
 0x298   :  { %v3524_v62 = vsub.f32 %v3400_v2, %v420_v57 }
 0x299   :  { %v3521_v60 = vsub.f32 %v3395_v1, %v419_v59  ;;  %v2995_v61 = vpop.f32.mrb[6].mxu0 }
 0x29a   :  { %v422_v63 = vmul.f32 7.8125e-05, %v2995_v61  ;;  %v340_v7 = vpop.f32.mrb[7].mxu0 }
 0x29b   :  { %v421_v12 = vmul.f32 7.8125e-05, %v340_v7  ;;  %3011 = vmatprep.mubr.msk.f32.mxu1 %vm31_vm1, %v3521_v60 }
 0x29c   :  { %3012 = vmatmul.mubr.msk.f32.vlgmr.msra.gmra.mrb[2].mxu1 %vm31_vm1, %v3524_v62  ;;  %v3534_v14 = vsub.f32 %v3421_v4, %v422_v63 }
 0x29d   :  { %v3531_v13 = vsub.f32 %v3409_v3, %v421_v12 }
 0x29f   :  { %3014 = vmatprep.mubr.msk.f32.mxu1 %vm31_vm1, %v3531_v13 }
 0x2a0   :  { %3015 = vmatmul.mubr.msk.f32.gmra.mrb[4].mxu1 %vm31_vm1, %v3534_v14 }
 0x2a1   :  { %3027 = vmatprep.mubr.msk.f32.mxu1 %vm3353_vm2, %v3354_v6 }
 0x2a9   :  { %v415_v15 = vpop.f32.mrb[8].mxu0 }
 0x2aa   :  { %v3008_v16 = vpop.f32.mrb[9].mxu0  ;;  %v427_v35 = vmul.f32 7.8125e-05, %v415_v15 }
 0x2ac   :  { %v3545_v36 = vsub.f32 %v3459_v22, %v427_v35 }
 0x2d1   :  { %v615_v37 = vpop.permute.xlu1 %614  ;;  %v620_v45 = vpop.permute.xlu0 %619 }
 0x2d5   :  { %v625_v46 = vpop.permute.xlu1 %624 }
 0x2d9   :  { %v630_v57 = vpop.permute.xlu1 %629 }
 0x36f   :  { %v3013_v17 = vpop.f32.mrb[2].mxu1 }
 0x370   :  { %v535_v18 = vmax.f32 %v3013_v17, 0.0  ;;  %v515_v19 = vpop.f32.mrb[3].mxu1  ;;  %vm641_vm10 = vcmp.gt.f32.partialorder %v3013_v17, 0.0 }
 0x371   :  { %v534_v20 = vmax.f32 %v515_v19, 0.0  ;;  %vm640_vm9 = vcmp.gt.f32.partialorder %v515_v19, 0.0 }
 0x373   :  { %v3274_v21 = vpack.c.bf16 %v535_v18, %v534_v20  ;;  %v3016_v24 = vpop.f32.mrb[4].mxu1 }
 0x374   :  { %v537_v25 = vmax.f32 %v3016_v24, 0.0  ;;  %v525_v30 = vpop.f32.mrb[5].mxu1  ;;  %vm643_vm12 = vcmp.gt.f32.partialorder %v3016_v24, 0.0 }
 0x375   :  { %v536_v31 = vmax.f32 %v525_v30, 0.0  ;;  %3275 = vmatpush3.bf16.msra.mxu1 %v3274_v21  ;;  %vm642_vm11 = vcmp.gt.f32.partialorder %v525_v30, 0.0 }
 0x376   :  { %3276 = vmatprep.subr.bf16.mxu1 %v3352_v5 }
 0x377   :  { %v3277_v33 = vpack.c.bf16 %v537_v25, %v536_v31 }
 0x379   :  { %3278 = vmatpush3.bf16.msra.mxu1 %v3277_v33 }
 0x37a   :  { %3025 = vmatprep.subr.mxu1 %v3354_v6 }
 0x37d   :  { %3026 = vmatpush3.msk.msra.mxu1 %vm141_vm3, %v3356_v23 }
 0x37e   :  { %3028 = vmatmul.mubr.msk.f32.vlgmr.msra.gmra.mrb[6].mxu1 %vm137_vm4, %v3545_v36  ;;  %3030 = vmatprep.subr.mxu1 %v3390_v0 }
 0x384   :  { %3031 = vmatpush3.xpose.msra.mxu1 %v3390_v0 }
 0x385   :  { %3279 = vmatprep.subr.bf16.mxu1 %v3352_v5 }
 0x451   :  { %v607_v38 = vpop.f32.mrb[6].mxu1 }
 0x452   :  { %v611_v40 = vsub.f32 %v607_v38, %v3475_v27  ;;  %v1384_v41 = vrot.slane %v607_v38, 7  ;;  %v3029_v42 = vpop.f32.mrb[7].mxu1 }
 0x454   :  { %v635_v43 = vrot.slane %v611_v40, %v3477_v28  ;;  %v3558_v44 = vsel %vm141_vm3, %v3479_v29, %v1384_v41 }
 0x456   :  { %v649_v47 = vmul.f32 %v635_v43, %v535_v18  ;;  %v648_v50 = vmul.f32 %v635_v43, %v534_v20  ;;  %v636_v51 = vmul.f32 %v635_v43, %v615_v37  ;;  %v637_v53 = vmul.f32 %v635_v43, %v620_v45 }
 0x457   :  { %v638_v54 = vmul.f32 %v635_v43, %v625_v46  ;;  %v650_v56 = vmul.f32 %v635_v43, %v536_v31  ;;  %v639_v29 = vmul.f32 %v635_v43, %v630_v57  ;;  %v651_v58 = vmul.f32 %v635_v43, %v537_v25 }
 0x458   :  { %654 = vadd.xlane.f32.xlu1 %v649_v47  ;;  %652 = vadd.xlane.f32.xlu0 %v648_v50 }
 0x459   :  { %3032 = vmatprep.mubr.msk.f32.mxu1 %vm640_vm9, %v636_v51 }
 0x45a   :  { %3033 = vmatmul.mubr.msk.f32.vlgmr.msra.gmra.mrb[8].mxu1 %vm641_vm10, %v637_v53 }
 0x45b   :  { %3281 = vmatpush3.bf16.xpose.msra.mxu1 %v3274_v21  ;;  %3035 = vmatprep.mubr.msk.f32.mxu1 %vm642_vm11, %v638_v54 }
 0x45c   :  { %656 = vadd.xlane.f32.xlu0 %v650_v56  ;;  %3282 = vmatprep.subr.bf16.mxu1 %v3352_v5 }
 0x45e   :  { %3036 = vmatmul.mubr.msk.f32.gmra.mrb[10].mxu1 %vm643_vm12, %v639_v29 }
 0x45f   :  { %3048 = vmatprep.mubr.msk.f32.mxu1 %vm3353_vm2, %v3354_v6 }
 0x460   :  { %658 = vadd.xlane.f32.xlu0 %v651_v58 }
 0x463   :  { %3284 = vmatpush3.bf16.xpose.msra.mxu1 %v3277_v33 }
 0x464   :  { %3046 = vmatprep.subr.mxu1 %v3354_v6 }
 0x46b   :  { %3047 = vmatpush3.xpose.msra.mxu1 %v3356_v23 }
 0x46c   :  { %3093 = vmatprep.subr.msk.mxu1 %vm44_vm0, %v3390_v0 }
 0x46e   :  { %3049 = vmatmul.mubr.f32.vlgmr.msra.gmra.mrb[12].mxu1 %v611_v40 }
 0x46f   :  { %3094 = vmatpush3.msk.msra.mxu1 %vm44_vm0, %v3390_v0 }
 0x470   :  { %3297 = vmatprep.subr.bf16.mxu1 %v3352_v5 }
 0x4e5   :  { %v655_v59 = vpop.xlane.xlu1 %654  ;;  %v653_v61 = vpop.xlane.xlu0 %652 }
 0x4e6   :  { %v826_v63 = vmul.f32 7.8125e-05, %v655_v59  ;;  %v825_v7 = vmul.f32 7.8125e-05, %v653_v61 }
 0x4e8   :  { %v830_v12 = vsub.f32 %v3505_v48, %v826_v63  ;;  %v829_v15 = vsub.f32 %v3508_v49, %v825_v7 }
 0x4e9   :  { %v657_v16 = vpop.xlane.xlu0 %656 }
 0x4ea   :  { %v827_v17 = vmul.f32 7.8125e-05, %v657_v16  ;;  %1015 = vperm.xlu0 %3350, %v830_v12   ;;  %1010 = vperm.xlu1 %3351, %v829_v15  }
 0x4ec   :  { %v831_v18 = vsub.f32 %v3513_v52, %v827_v17 }
 0x4ed   :  { %v659_v19 = vpop.xlane.xlu0 %658 }
 0x4ee   :  { %v828_v20 = vmul.f32 7.8125e-05, %v659_v19  ;;  %1020 = vperm.xlu1 %3351, %v831_v18  }
 0x4f0   :  { %v832_v21 = vsub.f32 %v3517_v55, %v828_v20 }
 0x4f2   :  { %1025 = vperm.xlu1 %3351, %v832_v21  }
 0x52d   :  { %v3034_v24 = vpop.f32.mrb[8].mxu1 }
 0x52e   :  { %v816_v25 = vmul.f32 7.8125e-05, %v3034_v24  ;;  %v726_v30 = vpop.f32.mrb[9].mxu1 }
 0x52f   :  { %v815_v31 = vmul.f32 7.8125e-05, %v726_v30 }
 0x530   :  { %v3578_v33 = vsub.f32 %v3524_v62, %v816_v25 }
 0x531   :  { %v3575_v48 = vsub.f32 %v3521_v60, %v815_v31  ;;  %v3037_v49 = vpop.f32.mrb[10].mxu1 }
 0x532   :  { %v818_v35 = vmul.f32 7.8125e-05, %v3037_v49  ;;  %v736_v37 = vpop.f32.mrb[11].mxu1 }
 0x533   :  { %v817_v52 = vmul.f32 7.8125e-05, %v736_v37  ;;  %3053 = vmatprep.mubr.msk.f32.mxu0 %vm31_vm1, %v3575_v48 }
 0x534   :  { %3054 = vmatmul.mubr.msk.f32.vlgmr.msra.gmra.mrb[10].mxu0 %vm31_vm1, %v3578_v33  ;;  %v3588_v38 = vsub.f32 %v3534_v14, %v818_v35  ;;  %v3632_v35 = vld [vmem:[%s3831_s0 + $0x4] sm:$0xf] }
 0x535   :  { %v3585_v55 = vsub.f32 %v3531_v13, %v817_v52 }
 0x537   :  { %3056 = vmatprep.mubr.msk.f32.mxu0 %vm31_vm1, %v3585_v55 }
 0x538   :  { %3057 = vmatmul.mubr.msk.f32.gmra.mrb[12].mxu0 %vm31_vm1, %v3588_v38 }
 0x539   :  { %3069 = vmatprep.mubr.msk.f32.mxu0 %vm3353_vm2, %v3354_v6 }
 0x541   :  { %v811_v60 = vpop.f32.mrb[12].mxu1 }
 0x542   :  { %v3050_v62 = vpop.f32.mrb[13].mxu1  ;;  %v823_v51 = vmul.f32 7.8125e-05, %v811_v60 }
 0x544   :  { %v3599_v53 = vsub.f32 %v3545_v36, %v823_v51 }
 0x569   :  { %v1011_v54 = vpop.permute.xlu1 %1010  ;;  %v1016_v63 = vpop.permute.xlu0 %1015 }
 0x56d   :  { %v1021_v58 = vpop.permute.xlu1 %1020 }
 0x571   :  { %v1026_v15 = vpop.permute.xlu1 %1025 }
 0x607   :  { %v3055_v40 = vpop.f32.mrb[10].mxu0 }
 0x608   :  { %v931_v41 = vmax.f32 %v3055_v40, 0.0  ;;  %v911_v42 = vpop.f32.mrb[11].mxu0  ;;  %vm1037_vm15 = vcmp.gt.f32.partialorder %v3055_v40, 0.0 }
 0x609   :  { %v930_v43 = vmax.f32 %v911_v42, 0.0  ;;  %vm1036_vm14 = vcmp.gt.f32.partialorder %v911_v42, 0.0 }
 0x60b   :  { %v3286_v13 = vpack.c.bf16 %v931_v41, %v930_v43  ;;  %v3058_v45 = vpop.f32.mrb[12].mxu0 }
 0x60c   :  { %v933_v46 = vmax.f32 %v3058_v45, 0.0  ;;  %v921_v14 = vpop.f32.mrb[13].mxu0  ;;  %vm1039_vm6 = vcmp.gt.f32.partialorder %v3058_v45, 0.0 }
 0x60d   :  { %v932_v47 = vmax.f32 %v921_v14, 0.0  ;;  %3287 = vmatpush3.bf16.msra.mxu0 %v3286_v13  ;;  %vm1038_vm5 = vcmp.gt.f32.partialorder %v921_v14, 0.0 }
 0x60e   :  { %3288 = vmatprep.subr.bf16.mxu0 %v3352_v5 }
 0x60f   :  { %v3289_v50 = vpack.c.bf16 %v933_v46, %v932_v47 }
 0x611   :  { %3290 = vmatpush3.bf16.msra.mxu0 %v3289_v50 }
 0x612   :  { %3067 = vmatprep.subr.mxu0 %v3354_v6 }
 0x615   :  { %3068 = vmatpush3.msk.msra.mxu0 %vm141_vm3, %v3356_v23 }
 0x616   :  { %3070 = vmatmul.mubr.msk.f32.vlgmr.msra.gmra.mrb[14].mxu0 %vm137_vm4, %v3599_v53  ;;  %3072 = vmatprep.subr.mxu0 %v3390_v0 }
 0x61c   :  { %3073 = vmatpush3.xpose.msra.mxu0 %v3390_v0 }
 0x61d   :  { %3291 = vmatprep.subr.bf16.mxu0 %v3352_v5 }
 0x6e9   :  { %v1003_v56 = vpop.f32.mrb[14].mxu0 }
 0x6ea   :  { %v1007_v57 = vsub.f32 %v1003_v56, %v3475_v27  ;;  %v1387_v29 = vrot.slane %v1003_v56, 6  ;;  %v3071_v36 = vpop.f32.mrb[15].mxu0 }
 0x6ec   :  { %v1031_v59 = vrot.slane %v1007_v57, %v3477_v28  ;;  %v3612_v61 = vsel %vm1393_vm13, %v3558_v44, %v1387_v29 }
 0x6ee   :  { %v1033_v7 = vmul.f32 %v1031_v59, %v1016_v63  ;;  %v1032_v12 = vmul.f32 %v1031_v59, %v1011_v54  ;;  %v1034_v0 = vmul.f32 %v1031_v59, %v1021_v58  ;;  %v1035_v27 = vmul.f32 %v1031_v59, %v1026_v15 }
 0x6f0   :  { %3074 = vmatprep.mubr.msk.f32.mxu0 %vm1036_vm14, %v1032_v12 }
 0x6f1   :  { %3075 = vmatmul.mubr.msk.f32.vlgmr.msra.gmra.mrb[16].mxu0 %vm1037_vm15, %v1033_v7 }
 0x6f2   :  { %3293 = vmatpush3.bf16.xpose.msra.mxu0 %v3286_v13  ;;  %3077 = vmatprep.mubr.msk.f32.mxu0 %vm1038_vm5, %v1034_v0 }
 0x6f3   :  { %3294 = vmatprep.subr.bf16.mxu0 %v3352_v5 }
 0x6f5   :  { %3078 = vmatmul.mubr.msk.f32.gmra.mrb[18].mxu0 %vm1039_vm6, %v1035_v27 }
 0x6f6   :  { %3090 = vmatprep.mubr.msk.f32.mxu0 %vm3353_vm2, %v3354_v6 }
 0x6fa   :  { %3296 = vmatpush3.bf16.xpose.msra.mxu0 %v3289_v50 }
 0x6fb   :  { %3088 = vmatprep.subr.mxu0 %v3354_v6 }
 0x702   :  { %3089 = vmatpush3.xpose.msra.mxu0 %v3356_v23 }
 0x703   :  { %3135 = vmatprep.subr.mxu0 %v3632_v35 }
 0x705   :  { %3091 = vmatmul.mubr.f32.vlgmr.msra.gmra.mrb[20].mxu0 %v1007_v57 }
 0x706   :  { %3136 = vmatpush3.xpose.msra.mxu0 %v3632_v35 }
 0x707   :  { %3309 = vmatprep.subr.bf16.mxu0 %v3352_v5 }
 0x7c4   :  { %v3076_v44 = vpop.f32.mrb[16].mxu0 }
 0x7c5   :  { %v1200_v16 = vmul.f32 7.8125e-05, %v3076_v44  ;;  %v1110_v17 = vpop.f32.mrb[17].mxu0 }
 0x7c6   :  { %v1199_v18 = vmul.f32 7.8125e-05, %v1110_v17 }
 0x7c7   :  { %v1204_v21 = vsub.f32 %v3578_v33, %v1200_v16 }
 0x7c8   :  { %v1203_v19 = vsub.f32 %v3575_v48, %v1199_v18  ;;  %v3079_v20 = vpop.f32.mrb[18].mxu0 }
 0x7c9   :  { %v1202_v24 = vmul.f32 7.8125e-05, %v3079_v20  ;;  %v1120_v25 = vpop.f32.mrb[19].mxu0 }
 0x7ca   :  { %v1201_v30 = vmul.f32 7.8125e-05, %v1120_v25  ;;  %3095 = vmatprep.mubr.msk.f32.mxu1 %vm31_vm1, %v1203_v19 }
 0x7cb   :  { %3096 = vmatmul.mubr.msk.f32.vlgmr.msra.gmra.mrb[14].mxu1 %vm31_vm1, %v1204_v21  ;;  %v1206_v49 = vsub.f32 %v3588_v38, %v1202_v24 }
 0x7cc   :  { %v1205_v31 = vsub.f32 %v3585_v55, %v1201_v30 }
 0x7ce   :  { %3098 = vmatprep.mubr.msk.f32.mxu1 %vm31_vm1, %v1205_v31 }
 0x7cf   :  { %3099 = vmatmul.mubr.msk.f32.gmra.mrb[16].mxu1 %vm31_vm1, %v1206_v49 }
 0x7d0   :  { %3111 = vmatprep.mubr.msk.f32.mxu1 %vm3353_vm2, %v3354_v6 }
 0x7d8   :  { %v1195_v48 = vpop.f32.mrb[20].mxu0 }
 0x7d9   :  { %v3092_v33 = vpop.f32.mrb[21].mxu0  ;;  %v1207_v13 = vmul.f32 7.8125e-05, %v1195_v48 }
 0x7db   :  { %v1208_v45 = vsub.f32 %v3599_v53, %v1207_v13 }
 0x89e   :  { %v3097_v37 = vpop.f32.mrb[14].mxu1 }
 0x89f   :  { %v1307_v52 = vmax.f32 %v3097_v37, 0.0  ;;  %v1287_v55 = vpop.f32.mrb[15].mxu1 }
 0x8a0   :  { %v1306_v38 = vmax.f32 %v1287_v55, 0.0 }
 0x8a2   :  { %v3298_v60 = vpack.c.bf16 %v1307_v52, %v1306_v38  ;;  %v3100_v62 = vpop.f32.mrb[16].mxu1 }
 0x8a3   :  { %v1309_v40 = vmax.f32 %v3100_v62, 0.0  ;;  %v1297_v41 = vpop.f32.mrb[17].mxu1 }
 0x8a4   :  { %v1308_v42 = vmax.f32 %v1297_v41, 0.0  ;;  %3299 = vmatpush3.bf16.msra.mxu1 %v3298_v60 }
 0x8a5   :  { %3300 = vmatprep.subr.bf16.mxu1 %v3352_v5 }
 0x8a6   :  { %v3301_v43 = vpack.c.bf16 %v1309_v40, %v1308_v42 }
 0x8a8   :  { %3302 = vmatpush3.bf16.msra.mxu1 %v3301_v43 }
 0x8a9   :  { %3109 = vmatprep.subr.mxu1 %v3354_v6 }
 0x8ac   :  { %3110 = vmatpush3.msk.msra.mxu1 %vm141_vm3, %v3356_v23 }
 0x8ad   :  { %3112 = vmatmul.mubr.msk.f32.vlgmr.msra.gmra.mrb[18].mxu1 %vm137_vm4, %v1208_v45  ;;  %3114 = vmatprep.subr.msk.mxu1 %vm44_vm0, %v3632_v35 }
 0x8ae   :  { %3115 = vmatpush3.msk.msra.mxu1 %vm44_vm0, %v3632_v35  ;;  %3116 = vmatprep.mubr.msk.f32.mxu1 %vm31_vm1, %v3395_v1 }
 0x8af   :  { %3303 = vmatprep.subr.bf16.mxu1 %v3352_v5 }
 0x8b1   :  { %3117 = vmatmul.mubr.msk.f32.vlgmr.msra.gmra.mrb[20].mxu1 %vm31_vm1, %v3400_v2 }
 0x8b2   :  { %3119 = vmatprep.mubr.msk.f32.mxu1 %vm31_vm1, %v3409_v3 }
 0x8b5   :  { %3120 = vmatmul.mubr.msk.f32.gmra.mrb[22].mxu1 %vm31_vm1, %v3421_v4 }
 0x8b6   :  { %3132 = vmatprep.mubr.msk.f32.mxu1 %vm3353_vm2, %v3354_v6 }
 0x980   :  { %v1379_v46 = vpop.f32.mrb[18].mxu1 }
 0x981   :  { %v1390_v14 = vrot.slane %v1379_v46, 5  ;;  %v3113_v47 = vpop.f32.mrb[19].mxu1 }
 0x983   :  { %v1396_v50 = vsel %vm1395_vm7, %v3612_v61, %v1390_v14  ;;  %v3677_v61 = vld [vmem:[%s3835_s1 + $0x1] sm:$0x1] }
 0x984   :  { %1397 = vst [vmem:[%s3836_s5] sm:$0xf] %v1396_v50  ;;  %v3118_v51 = vpop.f32.mrb[20].mxu1 }
 0x985   :  { %v1491_v53 = vmax.f32 %v3118_v51, 0.0  ;;  %v1471_v54 = vpop.f32.mrb[21].mxu1  ;;  %vm1574_vm9 = vcmp.gt.f32.partialorder %v3118_v51, 0.0 }
 0x986   :  { %v1490_v56 = vmax.f32 %v1471_v54, 0.0  ;;  %vm1573_vm8 = vcmp.gt.f32.partialorder %v1471_v54, 0.0 }
 0x988   :  { %v3304_v57 = vpack.c.bf16 %v1491_v53, %v1490_v56  ;;  %v3121_v29 = vpop.f32.mrb[22].mxu1 }
 0x989   :  { %v1493_v36 = vmax.f32 %v3121_v29, 0.0  ;;  %v1481_v58 = vpop.f32.mrb[23].mxu1  ;;  %vm1576_vm11 = vcmp.gt.f32.partialorder %v3121_v29, 0.0 }
 0x98a   :  { %v1492_v59 = vmax.f32 %v1481_v58, 0.0  ;;  %3305 = vmatpush3.bf16.msra.mxu1 %v3304_v57  ;;  %vm1575_vm10 = vcmp.gt.f32.partialorder %v1481_v58, 0.0 }
 0x98b   :  { %3306 = vmatprep.subr.bf16.mxu1 %v3352_v5 }
 0x98c   :  { %v3307_v63 = vpack.c.bf16 %v1493_v36, %v1492_v59 }
 0x98e   :  { %3308 = vmatpush3.bf16.msra.mxu1 %v3307_v63 }
 0x98f   :  { %3130 = vmatprep.subr.mxu1 %v3354_v6 }
 0x992   :  { %3131 = vmatpush3.msk.msra.mxu1 %vm141_vm3, %v3356_v23 }
 0x993   :  { %3133 = vmatmul.mubr.msk.f32.vlgmr.msra.gmra.mrb[24].mxu1 %vm137_vm4, %v3459_v22  ;;  %3156 = vmatprep.subr.msk.mxu1 %vm44_vm0, %v3632_v35 }
 0x994   :  { %3157 = vmatpush3.msk.msra.mxu1 %vm44_vm0, %v3632_v35 }
 0x995   :  { %3315 = vmatprep.subr.bf16.mxu1 %v3352_v5 }
 0xa66   :  { %v3679_v7 = vpop.f32.mrb[24].mxu1 }
 0xa67   :  { %v1564_v12 = vsub.f32 %v3679_v7, %v3677_v61  ;;  %v3134_v0 = vpop.f32.mrb[25].mxu1 }
 0xa69   :  { %v1568_v15 = vrot.slane %v1564_v12, %v3477_v28 }
 0xa6b   :  { %v1582_v27 = vmul.f32 %v1568_v15, %v1491_v53  ;;  %v1581_v44 = vmul.f32 %v1568_v15, %v1490_v56  ;;  %v1569_v16 = vmul.f32 %v1568_v15, %v3470_v26  ;;  %v1570_v17 = vmul.f32 %v1568_v15, %v3486_v34 }
 0xa6c   :  { %v1571_v18 = vmul.f32 %v1568_v15, %v3483_v32  ;;  %v1583_v19 = vmul.f32 %v1568_v15, %v1492_v59  ;;  %v1572_v20 = vmul.f32 %v1568_v15, %v3490_v39  ;;  %v1584_v26 = vmul.f32 %v1568_v15, %v1493_v36 }
 0xa6d   :  { %1587 = vadd.xlane.f32.xlu1 %v1582_v27  ;;  %1585 = vadd.xlane.f32.xlu0 %v1581_v44 }
 0xa6e   :  { %3137 = vmatprep.mubr.msk.f32.mxu0 %vm1573_vm8, %v1569_v16 }
 0xa6f   :  { %3138 = vmatmul.mubr.msk.f32.vlgmr.msra.gmra.mrb[22].mxu0 %vm1574_vm9, %v1570_v17 }
 0xa70   :  { %3311 = vmatpush3.bf16.xpose.msra.mxu0 %v3304_v57  ;;  %3140 = vmatprep.mubr.msk.f32.mxu0 %vm1575_vm10, %v1571_v18 }
 0xa71   :  { %1589 = vadd.xlane.f32.xlu0 %v1583_v19  ;;  %3312 = vmatprep.subr.bf16.mxu0 %v3352_v5 }
 0xa73   :  { %3141 = vmatmul.mubr.msk.f32.gmra.mrb[24].mxu0 %vm1576_vm11, %v1572_v20 }
 0xa74   :  { %3153 = vmatprep.mubr.msk.f32.mxu0 %vm3353_vm2, %v3354_v6 }
 0xa75   :  { %1591 = vadd.xlane.f32.xlu0 %v1584_v26 }
 0xa78   :  { %3314 = vmatpush3.bf16.xpose.msra.mxu0 %v3307_v63 }
 0xa79   :  { %3151 = vmatprep.subr.mxu0 %v3354_v6 }
 0xa80   :  { %3152 = vmatpush3.xpose.msra.mxu0 %v3356_v23 }
 0xa81   :  { %3321 = vmatprep.subr.bf16.mxu0 %v3352_v5 }
 0xa83   :  { %3154 = vmatmul.mubr.f32.vlgmr.msra.gmra.mrb[26].mxu0 %v1564_v12 }
 0xa84   :  { %3195 = vmatprep.mubr.msk.f32.mxu0 %vm3353_vm2, %v3354_v6 }
 0xafa   :  { %v1588_v32 = vpop.xlane.xlu1 %1587  ;;  %v1586_v34 = vpop.xlane.xlu0 %1585 }
 0xafb   :  { %v1759_v39 = vmul.f32 7.8125e-05, %v1588_v32  ;;  %v1758_v21 = vmul.f32 7.8125e-05, %v1586_v34 }
 0xafd   :  { %v3697_v24 = vsub.f32 %v3445_v10, %v1759_v39  ;;  %v3700_v25 = vsub.f32 %v3433_v8, %v1758_v21 }
 0xafe   :  { %v1590_v30 = vpop.xlane.xlu0 %1589 }
 0xaff   :  { %v1760_v31 = vmul.f32 7.8125e-05, %v1590_v30  ;;  %1948 = vperm.xlu0 %3350, %v3697_v24   ;;  %1943 = vperm.xlu1 %3351, %v3700_v25  }
 0xb01   :  { %v3705_v49 = vsub.f32 %v3438_v9, %v1760_v31 }
 0xb02   :  { %v1592_v48 = vpop.xlane.xlu0 %1591 }
 0xb03   :  { %v1761_v33 = vmul.f32 7.8125e-05, %v1592_v48  ;;  %1953 = vperm.xlu1 %3351, %v3705_v49  }
 0xb05   :  { %v3709_v37 = vsub.f32 %v3450_v11, %v1761_v33 }
 0xb07   :  { %1958 = vperm.xlu1 %3351, %v3709_v37  }
 0xb42   :  { %v3139_v8 = vpop.f32.mrb[22].mxu0 }
 0xb43   :  { %v1749_v10 = vmul.f32 7.8125e-05, %v3139_v8  ;;  %v1659_v52 = vpop.f32.mrb[23].mxu0 }
 0xb44   :  { %v1748_v55 = vmul.f32 7.8125e-05, %v1659_v52 }
 0xb45   :  { %v3716_v9 = vsub.f32 %v3400_v2, %v1749_v10 }
 0xb46   :  { %v3713_v38 = vsub.f32 %v3395_v1, %v1748_v55  ;;  %v3142_v60 = vpop.f32.mrb[24].mxu0 }
 0xb47   :  { %v1751_v62 = vmul.f32 7.8125e-05, %v3142_v60  ;;  %v1669_v40 = vpop.f32.mrb[25].mxu0 }
 0xb48   :  { %v1750_v41 = vmul.f32 7.8125e-05, %v1669_v40  ;;  %3158 = vmatprep.mubr.msk.f32.mxu1 %vm31_vm1, %v3713_v38 }
 0xb49   :  { %3159 = vmatmul.mubr.msk.f32.vlgmr.msra.gmra.mrb[26].mxu1 %vm31_vm1, %v3716_v9  ;;  %v3726_v42 = vsub.f32 %v3421_v4, %v1751_v62 }
 0xb4a   :  { %v3723_v11 = vsub.f32 %v3409_v3, %v1750_v41 }
 0xb4c   :  { %3161 = vmatprep.mubr.msk.f32.mxu1 %vm31_vm1, %v3723_v11 }
 0xb4d   :  { %3162 = vmatmul.mubr.msk.f32.gmra.mrb[28].mxu1 %vm31_vm1, %v3726_v42 }
 0xb4e   :  { %3174 = vmatprep.mubr.msk.f32.mxu1 %vm3353_vm2, %v3354_v6 }
 0xb56   :  { %v1744_v1 = vpop.f32.mrb[26].mxu0 }
 0xb57   :  { %v3155_v2 = vpop.f32.mrb[27].mxu0  ;;  %v1756_v53 = vmul.f32 7.8125e-05, %v1744_v1 }
 0xb59   :  { %v3738_v54 = vsub.f32 %v3459_v22, %v1756_v53 }
 0xb7e   :  { %v1944_v22 = vpop.permute.xlu1 %1943  ;;  %v1949_v63 = vpop.permute.xlu0 %1948 }
 0xb82   :  { %v1954_v12 = vpop.permute.xlu1 %1953 }
 0xb86   :  { %v1959_v17 = vpop.permute.xlu1 %1958 }
 0xc1c   :  { %v3160_v43 = vpop.f32.mrb[26].mxu1 }
 0xc1d   :  { %v1864_v13 = vmax.f32 %v3160_v43, 0.0  ;;  %v1844_v45 = vpop.f32.mrb[27].mxu1  ;;  %vm1970_vm14 = vcmp.gt.f32.partialorder %v3160_v43, 0.0 }
 0xc1e   :  { %v1863_v46 = vmax.f32 %v1844_v45, 0.0  ;;  %vm1969_vm12 = vcmp.gt.f32.partialorder %v1844_v45, 0.0 }
 0xc20   :  { %v3316_v3 = vpack.c.bf16 %v1864_v13, %v1863_v46  ;;  %v3163_v14 = vpop.f32.mrb[28].mxu1 }
 0xc21   :  { %v1866_v47 = vmax.f32 %v3163_v14, 0.0  ;;  %v1854_v4 = vpop.f32.mrb[29].mxu1  ;;  %vm1972_vm5 = vcmp.gt.f32.partialorder %v3163_v14, 0.0 }
 0xc22   :  { %v1865_v50 = vmax.f32 %v1854_v4, 0.0  ;;  %3317 = vmatpush3.bf16.msra.mxu1 %v3316_v3  ;;  %3323 = vmatpush3.bf16.xpose.msra.mxu0 %v3316_v3  ;;  %vm1971_vm15 = vcmp.gt.f32.partialorder %v1854_v4, 0.0 }
 0xc23   :  { %3318 = vmatprep.subr.bf16.mxu1 %v3352_v5  ;;  %3324 = vmatprep.subr.bf16.mxu0 %v3352_v5 }
 0xc24   :  { %v3319_v51 = vpack.c.bf16 %v1866_v47, %v1865_v50 }
 0xc26   :  { %3320 = vmatpush3.bf16.msra.mxu1 %v3319_v51 }
 0xc27   :  { %3172 = vmatprep.subr.mxu1 %v3354_v6 }
 0xc2a   :  { %3173 = vmatpush3.msk.msra.mxu1 %vm141_vm3, %v3356_v23  ;;  %3326 = vmatpush3.bf16.xpose.msra.mxu0 %v3319_v51 }
 0xc2b   :  { %3175 = vmatmul.mubr.msk.f32.vlgmr.msra.gmra.mrb[30].mxu1 %vm137_vm4, %v3738_v54  ;;  %3193 = vmatprep.subr.mxu0 %v3354_v6 }
 0xc2c   :  { %3177 = vmatprep.subr.mxu1 %v3632_v35 }
 0xc31   :  { %3178 = vmatpush3.xpose.msra.mxu1 %v3632_v35 }
 0xc32   :  { %3194 = vmatpush3.xpose.msra.mxu0 %v3356_v23  ;;  %3198 = vmatprep.subr.msk.mxu1 %vm44_vm0, %v3632_v35 }
 0xc33   :  { %3219 = vmatprep.subr.mxu0 %v3632_v35 }
 0xcfe   :  { %v1936_v56 = vpop.f32.mrb[30].mxu1 }
 0xcff   :  { %v1940_v57 = vsub.f32 %v1936_v56, %v3677_v61  ;;  %v2713_v29 = vrot.slane %v1936_v56, 7  ;;  %v3176_v36 = vpop.f32.mrb[31].mxu1 }
 0xd01   :  { %v1964_v58 = vrot.slane %v1940_v57, %v3477_v28  ;;  %v3755_v59 = vsel %vm141_vm3, %v3679_v7, %v2713_v29  ;;  %3196 = vmatmul.mubr.f32.vlgmr.msra.gmra.mrb[28].mxu0 %v1940_v57 }
 0xd02   :  { %3220 = vmatpush3.xpose.msra.mxu0 %v3632_v35 }
 0xd03   :  { %v1978_v0 = vmul.f32 %v1964_v58, %v1864_v13  ;;  %v1977_v15 = vmul.f32 %v1964_v58, %v1863_v46  ;;  %v1965_v27 = vmul.f32 %v1964_v58, %v1944_v22  ;;  %v1966_v44 = vmul.f32 %v1964_v58, %v1949_v63  ;;  %3240 = vmatprep.subr.msk.mxu0 %vm44_vm0, %v3632_v35 }
 0xd04   :  { %v1967_v16 = vmul.f32 %v1964_v58, %v1954_v12  ;;  %v1979_v7 = vmul.f32 %v1964_v58, %v1865_v50  ;;  %v1968_v18 = vmul.f32 %v1964_v58, %v1959_v17  ;;  %v1980_v19 = vmul.f32 %v1964_v58, %v1866_v47 }
 0xd05   :  { %1983 = vadd.xlane.f32.xlu1 %v1978_v0  ;;  %1981 = vadd.xlane.f32.xlu0 %v1977_v15 }
 0xd06   :  { %3179 = vmatprep.mubr.msk.f32.mxu1 %vm1969_vm12, %v1965_v27 }
 0xd07   :  { %3180 = vmatmul.mubr.msk.f32.vlgmr.msra.gmra.mrb[32].mxu1 %vm1970_vm14, %v1966_v44 }
 0xd08   :  { %3182 = vmatprep.mubr.msk.f32.mxu1 %vm1971_vm15, %v1967_v16  ;;  %3199 = vmatpush3.msk.msra.mxu1 %vm44_vm0, %v3632_v35 }
 0xd09   :  { %1985 = vadd.xlane.f32.xlu0 %v1979_v7  ;;  %3327 = vmatprep.subr.bf16.mxu1 %v3352_v5 }
 0xd0b   :  { %3183 = vmatmul.mubr.msk.f32.gmra.mrb[34].mxu1 %vm1972_vm5, %v1968_v18 }
 0xd0d   :  { %1987 = vadd.xlane.f32.xlu0 %v1980_v19 }
 0xd92   :  { %v1984_v20 = vpop.xlane.xlu1 %1983  ;;  %v1982_v26 = vpop.xlane.xlu0 %1981 }
 0xd93   :  { %v2155_v32 = vmul.f32 7.8125e-05, %v1984_v20  ;;  %v2154_v34 = vmul.f32 7.8125e-05, %v1982_v26 }
 0xd95   :  { %v2159_v39 = vsub.f32 %v3697_v24, %v2155_v32  ;;  %v2158_v21 = vsub.f32 %v3700_v25, %v2154_v34 }
 0xd96   :  { %v1986_v30 = vpop.xlane.xlu0 %1985 }
 0xd97   :  { %v2156_v31 = vmul.f32 7.8125e-05, %v1986_v30  ;;  %2344 = vperm.xlu0 %3350, %v2159_v39   ;;  %2339 = vperm.xlu1 %3351, %v2158_v21  }
 0xd99   :  { %v2160_v48 = vsub.f32 %v3705_v49, %v2156_v31 }
 0xd9a   :  { %v1988_v33 = vpop.xlane.xlu0 %1987 }
 0xd9b   :  { %v2157_v8 = vmul.f32 7.8125e-05, %v1988_v33  ;;  %2349 = vperm.xlu1 %3351, %v2160_v48  }
 0xd9d   :  { %v2161_v10 = vsub.f32 %v3709_v37, %v2157_v8 }
 0xd9f   :  { %2354 = vperm.xlu1 %3351, %v2161_v10  }
 0xdd4   :  { %v2140_v52 = vpop.f32.mrb[28].mxu0 }
 0xdd5   :  { %v3197_v55 = vpop.f32.mrb[29].mxu0  ;;  %v2152_v50 = vmul.f32 7.8125e-05, %v2140_v52 }
 0xdd7   :  { %v3792_v51 = vsub.f32 %v3738_v54, %v2152_v50 }
 0xdda   :  { %v3181_v60 = vpop.f32.mrb[32].mxu1 }
 0xddb   :  { %v2145_v62 = vmul.f32 7.8125e-05, %v3181_v60  ;;  %v2055_v40 = vpop.f32.mrb[33].mxu1 }
 0xddc   :  { %v2144_v24 = vmul.f32 7.8125e-05, %v2055_v40 }
 0xddd   :  { %v3771_v1 = vsub.f32 %v3716_v9, %v2145_v62 }
 0xdde   :  { %v3768_v25 = vsub.f32 %v3713_v38, %v2144_v24  ;;  %v3184_v41 = vpop.f32.mrb[34].mxu1 }
 0xddf   :  { %v2147_v49 = vmul.f32 7.8125e-05, %v3184_v41  ;;  %v2065_v2 = vpop.f32.mrb[35].mxu1 }
 0xde0   :  { %v2146_v43 = vmul.f32 7.8125e-05, %v2065_v2  ;;  %3200 = vmatprep.mubr.msk.f32.mxu1 %vm31_vm1, %v3768_v25 }
 0xde1   :  { %3201 = vmatmul.mubr.msk.f32.vlgmr.msra.gmra.mrb[36].mxu1 %vm31_vm1, %v3771_v1  ;;  %v3781_v13 = vsub.f32 %v3726_v42, %v2147_v49 }
 0xde2   :  { %v3778_v37 = vsub.f32 %v3723_v11, %v2146_v43 }
 0xde4   :  { %3203 = vmatprep.mubr.msk.f32.mxu1 %vm31_vm1, %v3778_v37 }
 0xde5   :  { %3204 = vmatmul.mubr.msk.f32.gmra.mrb[38].mxu1 %vm31_vm1, %v3781_v13 }
 0xde6   :  { %3216 = vmatprep.mubr.msk.f32.mxu1 %vm3353_vm2, %v3354_v6 }
 0xe16   :  { %v2340_v53 = vpop.permute.xlu1 %2339  ;;  %v2345_v63 = vpop.permute.xlu0 %2344 }
 0xe1a   :  { %v2350_v29 = vpop.permute.xlu1 %2349 }
 0xe1e   :  { %v2355_v27 = vpop.permute.xlu1 %2354 }
 0xeb4   :  { %v3202_v38 = vpop.f32.mrb[36].mxu1 }
 0xeb5   :  { %v2260_v9 = vmax.f32 %v3202_v38, 0.0  ;;  %v2240_v45 = vpop.f32.mrb[37].mxu1  ;;  %vm2366_vm8 = vcmp.gt.f32.partialorder %v3202_v38, 0.0 }
 0xeb6   :  { %v2259_v46 = vmax.f32 %v2240_v45, 0.0  ;;  %vm2365_vm6 = vcmp.gt.f32.partialorder %v2240_v45, 0.0 }
 0xeb8   :  { %v3328_v3 = vpack.c.bf16 %v2260_v9, %v2259_v46  ;;  %v3205_v14 = vpop.f32.mrb[38].mxu1 }
 0xeb9   :  { %v2262_v11 = vmax.f32 %v3205_v14, 0.0  ;;  %v2250_v47 = vpop.f32.mrb[39].mxu1  ;;  %vm2368_vm10 = vcmp.gt.f32.partialorder %v3205_v14, 0.0 }
 0xeba   :  { %v2261_v4 = vmax.f32 %v2250_v47, 0.0  ;;  %3329 = vmatpush3.bf16.msra.mxu1 %v3328_v3  ;;  %vm2367_vm9 = vcmp.gt.f32.partialorder %v2250_v47, 0.0 }
 0xebb   :  { %3330 = vmatprep.subr.bf16.mxu1 %v3352_v5 }
 0xebc   :  { %v3331_v42 = vpack.c.bf16 %v2262_v11, %v2261_v4 }
 0xebe   :  { %3332 = vmatpush3.bf16.msra.mxu1 %v3331_v42 }
 0xebf   :  { %3214 = vmatprep.subr.mxu1 %v3354_v6 }
 0xec2   :  { %3215 = vmatpush3.msk.msra.mxu1 %vm141_vm3, %v3356_v23 }
 0xec3   :  { %3217 = vmatmul.mubr.msk.f32.vlgmr.msra.gmra.mrb[40].mxu1 %vm137_vm4, %v3792_v51  ;;  %3333 = vmatprep.subr.bf16.mxu1 %v3352_v5 }
 0xec4   :  { %3237 = vmatprep.mubr.msk.f32.mxu1 %vm3353_vm2, %v3354_v6 }
 0xec9   :  { %3335 = vmatpush3.bf16.xpose.msra.mxu1 %v3328_v3 }
 0xeca   :  { %3336 = vmatprep.subr.bf16.mxu1 %v3352_v5 }
 0xed1   :  { %3338 = vmatpush3.bf16.xpose.msra.mxu1 %v3331_v42 }
 0xed2   :  { %3235 = vmatprep.subr.mxu1 %v3354_v6 }
 0xed9   :  { %3236 = vmatpush3.xpose.msra.mxu1 %v3356_v23 }
 0xf96   :  { %v2332_v54 = vpop.f32.mrb[40].mxu1 }
 0xf97   :  { %v2336_v22 = vsub.f32 %v2332_v54, %v3677_v61  ;;  %v2716_v56 = vrot.slane %v2332_v54, 6  ;;  %v3218_v57 = vpop.f32.mrb[41].mxu1 }
 0xf99   :  { %v2360_v36 = vrot.slane %v2336_v22, %v3477_v28  ;;  %v2722_v58 = vsel %vm1393_vm13, %v3755_v59, %v2716_v56  ;;  %3238 = vmatmul.mubr.f32.vlgmr.msra.gmra.mrb[42].mxu1 %v2336_v22 }
 0xf9b   :  { %v2362_v12 = vmul.f32 %v2360_v36, %v2345_v63  ;;  %v2361_v0 = vmul.f32 %v2360_v36, %v2340_v53  ;;  %v2363_v15 = vmul.f32 %v2360_v36, %v2350_v29  ;;  %v2364_v61 = vmul.f32 %v2360_v36, %v2355_v27 }
 0xf9d   :  { %3221 = vmatprep.mubr.msk.f32.mxu0 %vm2365_vm6, %v2361_v0 }
 0xf9e   :  { %3222 = vmatmul.mubr.msk.f32.vlgmr.msra.gmra.mrb[30].mxu0 %vm2366_vm8, %v2362_v12 }
 0xf9f   :  { %3224 = vmatprep.mubr.msk.f32.mxu0 %vm2367_vm9, %v2363_v15  ;;  %3241 = vmatpush3.msk.msra.mxu0 %vm44_vm0, %v3632_v35 }
 0xfa0   :  { %3339 = vmatprep.subr.bf16.mxu0 %v3352_v5 }
 0xfa2   :  { %3225 = vmatmul.mubr.msk.f32.gmra.mrb[32].mxu0 %vm2368_vm10, %v2364_v61 }
0x106c   :  { %v2524_v28 = vpop.f32.mrb[42].mxu1 }
0x106d   :  { %v3239_v59 = vpop.f32.mrb[43].mxu1  ;;  %v2536_v62 = vmul.f32 7.8125e-05, %v2524_v28 }
0x106f   :  { %v2537_v40 = vsub.f32 %v3792_v51, %v2536_v62 }
0x1071   :  { %v3223_v44 = vpop.f32.mrb[30].mxu0 }
0x1072   :  { %v2529_v16 = vmul.f32 7.8125e-05, %v3223_v44  ;;  %v2439_v7 = vpop.f32.mrb[31].mxu0 }
0x1073   :  { %v2528_v17 = vmul.f32 7.8125e-05, %v2439_v7 }
0x1074   :  { %v2533_v20 = vsub.f32 %v3771_v1, %v2529_v16 }
0x1075   :  { %v2532_v18 = vsub.f32 %v3768_v25, %v2528_v17  ;;  %v3226_v19 = vpop.f32.mrb[32].mxu0 }
0x1076   :  { %v2531_v26 = vmul.f32 7.8125e-05, %v3226_v19  ;;  %v2449_v32 = vpop.f32.mrb[33].mxu0 }
0x1077   :  { %v2530_v34 = vmul.f32 7.8125e-05, %v2449_v32  ;;  %3242 = vmatprep.mubr.msk.f32.mxu0 %vm31_vm1, %v2532_v18 }
0x1078   :  { %3243 = vmatmul.mubr.msk.f32.vlgmr.msra.gmra.mrb[34].mxu0 %vm31_vm1, %v2533_v20  ;;  %v2535_v39 = vsub.f32 %v3781_v13, %v2531_v26 }
0x1079   :  { %v2534_v35 = vsub.f32 %v3778_v37, %v2530_v34 }
0x107b   :  { %3245 = vmatprep.mubr.msk.f32.mxu0 %vm31_vm1, %v2534_v35 }
0x107c   :  { %3246 = vmatmul.mubr.msk.f32.gmra.mrb[36].mxu0 %vm31_vm1, %v2535_v39 }
0x107d   :  { %3258 = vmatprep.mubr.msk.f32.mxu0 %vm3353_vm2, %v3354_v6 }
0x114b   :  { %v3244_v21 = vpop.f32.mrb[34].mxu0 }
0x114c   :  { %v2636_v30 = vmax.f32 %v3244_v21, 0.0  ;;  %v2616_v31 = vpop.f32.mrb[35].mxu0 }
0x114d   :  { %v2635_v48 = vmax.f32 %v2616_v31, 0.0 }
0x114f   :  { %v3340_v33 = vpack.c.bf16 %v2636_v30, %v2635_v48  ;;  %v3247_v8 = vpop.f32.mrb[36].mxu0 }
0x1150   :  { %v2638_v10 = vmax.f32 %v3247_v8, 0.0  ;;  %v2626_v52 = vpop.f32.mrb[37].mxu0 }
0x1151   :  { %v2637_v55 = vmax.f32 %v2626_v52, 0.0  ;;  %3341 = vmatpush3.bf16.msra.mxu0 %v3340_v33 }
0x1152   :  { %3342 = vmatprep.subr.bf16.mxu0 %v3352_v5 }
0x1153   :  { %v3343_v60 = vpack.c.bf16 %v2638_v10, %v2637_v55 }
0x1155   :  { %3344 = vmatpush3.bf16.msra.mxu0 %v3343_v60 }
0x1156   :  { %3256 = vmatprep.subr.mxu0 %v3354_v6 }
0x1159   :  { %3257 = vmatpush3.msk.msra.mxu0 %vm141_vm3, %v3356_v23 }
0x115a   :  { %3259 = vmatmul.mubr.msk.f32.vlgmr.msra.gmra.mrb[38].mxu0 %vm137_vm4, %v2537_v40 }
0x122d   :  { %v2708_v24 = vpop.f32.mrb[38].mxu0 }
0x122e   :  { %v2719_v25 = vrot.slane %v2708_v24, 5  ;;  %v3260_v41 = vpop.f32.mrb[39].mxu0 }
0x1230   :  { %v2723_v1 = vsel %vm1395_vm7, %v2722_v58, %v2719_v25 }
0x1231   :  { %2812 = vst [vmem:[%s3836_s5 + $0x4] sm:$0xf] %v2723_v1 }

</bundles_post_ra>
